<compile_context>
chip_gen: v7x
topology: tpu7x:2x2x1
jax: 0.10.0
libtpu: 0.0.40
codegen_flags: <defaults>
</compile_context>

<pallas_src>
import functools

import jax
import jax.numpy as jnp
from jax import lax
from jax.experimental import pallas as pl
from jax.experimental.pallas import tpu as pltpu


def _patch_merging_kernel(x_ref, sel_ref, w_ref, b_ref, o_ref, *, t_rows):
    """One grid step: one batch element, `t_rows` output rows, full width.

    x_ref:   (1, C, Hb, W)      NCHW input row band (Hb >= 2*t_rows)
    sel_ref: (2, W, Wo)         0/1 selection matrices: sel[kw, w, wo] = (w == 2*wo + kw)
    w_ref:   (2, Cout, 2C)      conv weight packed as [kw, out, kh*C + in]
    b_ref:   (Cout, 1)          bias, pre-cast to f32 in the wrapper
    o_ref:   (1, Cout, t_rows, Wo)  NCHW output band (written directly)
    """
    in_dtype = x_ref.dtype

    # Hoist the tiny shared operands out of the row loop.
    sel0 = sel_ref[0]            # (W, Wo)   picks columns 2*wo + 0
    sel1 = sel_ref[1]            # (W, Wo)   picks columns 2*wo + 1
    w0 = w_ref[0]                # (Cout, 2C) weights for kw = 0
    w1 = w_ref[1]                # (Cout, 2C) weights for kw = 1
    bias = b_ref[...]            # (Cout, 1)  f32

    # Static (fully unrolled) loop over the output rows of this band; all ref
    # indices are static and every dot is a plain 2-D MXU matmul.
    for h in range(t_rows):
        # The two input rows feeding output row h, stacked on sublanes:
        # rows[kh*C + c, w] = x[c, 2h + kh, w]  -> (2C, W)
        rows = jnp.concatenate(
            [x_ref[0, :, 2 * h, :], x_ref[0, :, 2 * h + 1, :]], axis=0)

        # Stride-2 width de-interleave on the MXU (exact 0/1 selection):
        # d_kw[r, wo] = rows[r, 2*wo + kw]
        d0 = jnp.dot(rows, sel0,
                     preferred_element_type=jnp.float32).astype(in_dtype)
        d1 = jnp.dot(rows, sel1,
                     preferred_element_type=jnp.float32).astype(in_dtype)

        # Channel + kh contraction with f32 accumulation.
        acc = jnp.dot(w0, d0, preferred_element_type=jnp.float32)
        acc = acc + jnp.dot(w1, d1, preferred_element_type=jnp.float32)

        o_ref[0, :, h, :] = (acc + bias).astype(o_ref.dtype)


def _pick_band_rows(ho):
    """Largest sublane-friendly divisor of Ho (keeps static unroll bounded)."""
    for t in (32, 16, 8):
        if ho % t == 0:
            return t
    return ho  # small / awkward Ho: one band covers all output rows


def patch_merging_forward(x, weight, bias):
    """x: (B, C, H, W) NCHW; weight: (2C, C, 2, 2) OIHW; bias: (2C,) -> NCHW out."""
    B, C, H, W = x.shape
    Cout = weight.shape[0]
    Ho, Wo = H // 2, W // 2

    t_rows = _pick_band_rows(Ho)
    # Input row-band height: 2*t_rows (always a multiple of 8 when banded),
    # or the full H when a single band spans all output rows (handles odd H).
    in_h = 2 * t_rows if t_rows < Ho else H

    # Tiny, parameter-sized pre-packing only (no activation-sized HBM traffic).
    # w_cat[kw, co, kh*C + ci] = weight[co, ci, kh, kw]
    w_cat = jnp.transpose(weight, (3, 0, 2, 1)).reshape(2, Cout, 2 * C)
    b2 = bias.reshape(Cout, 1).astype(jnp.float32)

    # 0/1 width-selection matrices, hoisted out of the kernel entirely.
    w_idx = jnp.arange(W)[:, None]
    o_idx = jnp.arange(Wo)[None, :]
    sel = jnp.stack(
        [(w_idx == 2 * o_idx + kw) for kw in (0, 1)], axis=0).astype(x.dtype)

    grid = (B, Ho // t_rows)
    kernel = functools.partial(_patch_merging_kernel, t_rows=t_rows)

    out = pl.pallas_call(
        kernel,
        out_shape=jax.ShapeDtypeStruct((B, Cout, Ho, Wo), x.dtype),
        grid_spec=pltpu.PrefetchScalarGridSpec(
            num_scalar_prefetch=0,
            grid=grid,
            in_specs=[
                pl.BlockSpec((1, C, in_h, W), lambda b, i: (b, 0, i, 0)),
                pl.BlockSpec((2, W, Wo), lambda b, i: (0, 0, 0)),
                pl.BlockSpec((2, Cout, 2 * C), lambda b, i: (0, 0, 0)),
                pl.BlockSpec((Cout, 1), lambda b, i: (0, 0)),
            ],
            out_specs=pl.BlockSpec((1, Cout, t_rows, Wo),
                                   lambda b, i: (b, 0, i, 0)),
        ),
        compiler_params=pltpu.CompilerParams(
            dimension_semantics=("parallel", "parallel"),
            vmem_limit_bytes=32 * 1024 * 1024,
        ),
    )(x, sel, w_cat, b2)
    return out


if __name__ == "__main__":
    key = jax.random.PRNGKey(0)
    k_x, k_w, k_b = jax.random.split(key, 3)

    B, C, H, W = 2, 4, 16, 16          # hidden_dim = 4
    Cout = 2 * C

    x = jax.random.normal(k_x, (B, C, H, W), dtype=jnp.float32)
    # Deterministic synthetic parameters (shapes from nn.Conv2d(C, 2C, 2, 2, 0)).
    fan_in = C * 2 * 2
    bound = 1.0 / (fan_in ** 0.5)
    weight = jax.random.uniform(k_w, (Cout, C, 2, 2), jnp.float32, -bound, bound)
    bias = jax.random.uniform(k_b, (Cout,), jnp.float32, -bound, bound)

    out = patch_merging_forward(x, weight, bias)
    out = jax.block_until_ready(out)

    # Reference: plain XLA conv (NCHW / OIHW), stride 2, VALID padding.
    ref = lax.conv_general_dilated(
        x, weight, window_strides=(2, 2), padding="VALID",
        dimension_numbers=("NCHW", "OIHW", "NCHW"),
    ) + bias.reshape(1, Cout, 1, 1)

    assert out.shape == (B, Cout, H // 2, W // 2), out.shape
    assert jnp.allclose(out, ref, atol=1e-4, rtol=1e-4), "mismatch vs reference conv"

    print("KERNEL_OK")
</pallas_src>

<mosaic_0001>
module attributes {stable_mosaic.version = 11 : i64} {
  func.func @_patch_merging_kernel(%arg0: i32, %arg1: i32, %arg2: memref<1x4x16x16xf32, #tpu.memory_space<vmem>>, %arg3: memref<2x16x8xf32, #tpu.memory_space<vmem>>, %arg4: memref<2x8x8xf32, #tpu.memory_space<vmem>>, %arg5: memref<8x1xf32, #tpu.memory_space<vmem>>, %arg6: memref<1x8x8x8xf32, #tpu.memory_space<vmem>>) attributes {dimension_semantics = [#tpu.dimension_semantics<parallel>, #tpu.dimension_semantics<parallel>], iteration_bounds = array<i64: 2, 1>, scalar_prefetch = 0 : i64, scratch_operands = 0 : i64, tpu.core_type = #tpu.core_type<tc>, window_params = [{transform_indices = @transform_0, window_bounds = array<i64: 1, 4, 16, 16>}, {pipeline_mode = #tpu.pipeline_mode<synchronous>, transform_indices = @transform_1, window_bounds = array<i64: 2, 16, 8>}, {pipeline_mode = #tpu.pipeline_mode<synchronous>, transform_indices = @transform_2, window_bounds = array<i64: 2, 8, 8>}, {pipeline_mode = #tpu.pipeline_mode<synchronous>, transform_indices = @transform_3, window_bounds = array<i64: 8, 1>}, {transform_indices = @transform_4, window_bounds = array<i64: 1, 8, 8, 8>}]} {
    %c0 = arith.constant 0 : index
    %c0_0 = arith.constant 0 : index
    %c0_1 = arith.constant 0 : index
    %0 = vector.load %arg3[%c0, %c0_0, %c0_1] : memref<2x16x8xf32, #tpu.memory_space<vmem>>, vector<1x16x8xf32>
    %1 = vector.shape_cast %0 : vector<1x16x8xf32> to vector<16x8xf32>
    %c1 = arith.constant 1 : index
    %c0_2 = arith.constant 0 : index
    %c0_3 = arith.constant 0 : index
    %2 = vector.load %arg3[%c1, %c0_2, %c0_3] : memref<2x16x8xf32, #tpu.memory_space<vmem>>, vector<1x16x8xf32>
    %3 = vector.shape_cast %2 : vector<1x16x8xf32> to vector<16x8xf32>
    %c0_4 = arith.constant 0 : index
    %c0_5 = arith.constant 0 : index
    %c0_6 = arith.constant 0 : index
    %4 = vector.load %arg4[%c0_4, %c0_5, %c0_6] : memref<2x8x8xf32, #tpu.memory_space<vmem>>, vector<1x8x8xf32>
    %5 = vector.shape_cast %4 : vector<1x8x8xf32> to vector<8x8xf32>
    %c1_7 = arith.constant 1 : index
    %c0_8 = arith.constant 0 : index
    %c0_9 = arith.constant 0 : index
    %6 = vector.load %arg4[%c1_7, %c0_8, %c0_9] : memref<2x8x8xf32, #tpu.memory_space<vmem>>, vector<1x8x8xf32>
    %7 = vector.shape_cast %6 : vector<1x8x8xf32> to vector<8x8xf32>
    %c0_10 = arith.constant 0 : index
    %c0_11 = arith.constant 0 : index
    %8 = vector.load %arg5[%c0_10, %c0_11] : memref<8x1xf32, #tpu.memory_space<vmem>>, vector<8x1xf32>
    %c0_12 = arith.constant 0 : index
    %c0_13 = arith.constant 0 : index
    %c0_14 = arith.constant 0 : index
    %c0_15 = arith.constant 0 : index
    %9 = vector.load %arg2[%c0_12, %c0_13, %c0_14, %c0_15] : memref<1x4x16x16xf32, #tpu.memory_space<vmem>>, vector<1x4x1x16xf32>
    %10 = vector.shape_cast %9 : vector<1x4x1x16xf32> to vector<4x16xf32>
    %c0_16 = arith.constant 0 : index
    %c0_17 = arith.constant 0 : index
    %c1_18 = arith.constant 1 : index
    %c0_19 = arith.constant 0 : index
    %11 = vector.load %arg2[%c0_16, %c0_17, %c1_18, %c0_19] : memref<1x4x16x16xf32, #tpu.memory_space<vmem>>, vector<1x4x1x16xf32>
    %12 = vector.shape_cast %11 : vector<1x4x1x16xf32> to vector<4x16xf32>
    %13 = tpu.concatenate %10, %12 in 0 : vector<4x16xf32>, vector<4x16xf32> -> vector<8x16xf32>
    %cst = arith.constant dense<0.000000e+00> : vector<8x8xf32>
    %14 = tpu.matmul %13, %1, %cst {dimension_numbers = #tpu.dot_dimension_numbers<[1], [0], [0], [1], [0, 0, 1, 1], [], []>} : vector<8x16xf32>, vector<16x8xf32>, vector<8x8xf32> -> vector<8x8xf32>
    %cst_20 = arith.constant dense<0.000000e+00> : vector<8x8xf32>
    %15 = tpu.matmul %13, %3, %cst_20 {dimension_numbers = #tpu.dot_dimension_numbers<[1], [0], [0], [1], [0, 0, 1, 1], [], []>} : vector<8x16xf32>, vector<16x8xf32>, vector<8x8xf32> -> vector<8x8xf32>
    %cst_21 = arith.constant dense<0.000000e+00> : vector<8x8xf32>
    %16 = tpu.matmul %5, %14, %cst_21 {dimension_numbers = #tpu.dot_dimension_numbers<[1], [0], [0], [1], [0, 0, 1, 1], [], []>} : vector<8x8xf32>, vector<8x8xf32>, vector<8x8xf32> -> vector<8x8xf32>
    %cst_22 = arith.constant dense<0.000000e+00> : vector<8x8xf32>
    %17 = tpu.matmul %7, %15, %cst_22 {dimension_numbers = #tpu.dot_dimension_numbers<[1], [0], [0], [1], [0, 0, 1, 1], [], []>} : vector<8x8xf32>, vector<8x8xf32>, vector<8x8xf32> -> vector<8x8xf32>
    %18 = arith.addf %16, %17 : vector<8x8xf32>
    %19 = vector.broadcast %8 : vector<8x1xf32> to vector<8x8xf32>
    %20 = arith.addf %18, %19 : vector<8x8xf32>
    %c0_23 = arith.constant 0 : index
    %c0_24 = arith.constant 0 : index
    %c0_25 = arith.constant 0 : index
    %c0_26 = arith.constant 0 : index
    %21 = vector.load %arg6[%c0_23, %c0_24, %c0_25, %c0_26] : memref<1x8x8x8xf32, #tpu.memory_space<vmem>>, vector<1x8x1x8xf32>
    %22 = vector.shape_cast %21 : vector<1x8x1x8xf32> to vector<8x8xf32>
    %23 = vector.shape_cast %20 : vector<8x8xf32> to vector<1x8x1x8xf32>
    tpu.vector_store %arg6[%c0_23, %c0_24, %c0_25, %c0_26], %23 {strides = array<i32>} : memref<1x8x8x8xf32, #tpu.memory_space<vmem>>, vector<1x8x1x8xf32>,
    %c0_27 = arith.constant 0 : index
    %c0_28 = arith.constant 0 : index
    %c2 = arith.constant 2 : index
    %c0_29 = arith.constant 0 : index
    %24 = vector.load %arg2[%c0_27, %c0_28, %c2, %c0_29] : memref<1x4x16x16xf32, #tpu.memory_space<vmem>>, vector<1x4x1x16xf32>
    %25 = vector.shape_cast %24 : vector<1x4x1x16xf32> to vector<4x16xf32>
    %c0_30 = arith.constant 0 : index
    %c0_31 = arith.constant 0 : index
    %c3 = arith.constant 3 : index
    %c0_32 = arith.constant 0 : index
    %26 = vector.load %arg2[%c0_30, %c0_31, %c3, %c0_32] : memref<1x4x16x16xf32, #tpu.memory_space<vmem>>, vector<1x4x1x16xf32>
    %27 = vector.shape_cast %26 : vector<1x4x1x16xf32> to vector<4x16xf32>
    %28 = tpu.concatenate %25, %27 in 0 : vector<4x16xf32>, vector<4x16xf32> -> vector<8x16xf32>
    %cst_33 = arith.constant dense<0.000000e+00> : vector<8x8xf32>
    %29 = tpu.matmul %28, %1, %cst_33 {dimension_numbers = #tpu.dot_dimension_numbers<[1], [0], [0], [1], [0, 0, 1, 1], [], []>} : vector<8x16xf32>, vector<16x8xf32>, vector<8x8xf32> -> vector<8x8xf32>
    %cst_34 = arith.constant dense<0.000000e+00> : vector<8x8xf32>
    %30 = tpu.matmul %28, %3, %cst_34 {dimension_numbers = #tpu.dot_dimension_numbers<[1], [0], [0], [1], [0, 0, 1, 1], [], []>} : vector<8x16xf32>, vector<16x8xf32>, vector<8x8xf32> -> vector<8x8xf32>
    %cst_35 = arith.constant dense<0.000000e+00> : vector<8x8xf32>
    %31 = tpu.matmul %5, %29, %cst_35 {dimension_numbers = #tpu.dot_dimension_numbers<[1], [0], [0], [1], [0, 0, 1, 1], [], []>} : vector<8x8xf32>, vector<8x8xf32>, vector<8x8xf32> -> vector<8x8xf32>
    %cst_36 = arith.constant dense<0.000000e+00> : vector<8x8xf32>
    %32 = tpu.matmul %7, %30, %cst_36 {dimension_numbers = #tpu.dot_dimension_numbers<[1], [0], [0], [1], [0, 0, 1, 1], [], []>} : vector<8x8xf32>, vector<8x8xf32>, vector<8x8xf32> -> vector<8x8xf32>
    %33 = arith.addf %31, %32 : vector<8x8xf32>
    %34 = vector.broadcast %8 : vector<8x1xf32> to vector<8x8xf32>
    %35 = arith.addf %33, %34 : vector<8x8xf32>
    %c0_37 = arith.constant 0 : index
    %c0_38 = arith.constant 0 : index
    %c1_39 = arith.constant 1 : index
    %c0_40 = arith.constant 0 : index
    %36 = vector.load %arg6[%c0_37, %c0_38, %c1_39, %c0_40] : memref<1x8x8x8xf32, #tpu.memory_space<vmem>>, vector<1x8x1x8xf32>
    %37 = vector.shape_cast %36 : vector<1x8x1x8xf32> to vector<8x8xf32>
    %38 = vector.shape_cast %35 : vector<8x8xf32> to vector<1x8x1x8xf32>
    tpu.vector_store %arg6[%c0_37, %c0_38, %c1_39, %c0_40], %38 {strides = array<i32>} : memref<1x8x8x8xf32, #tpu.memory_space<vmem>>, vector<1x8x1x8xf32>,
    %c0_41 = arith.constant 0 : index
    %c0_42 = arith.constant 0 : index
    %c4 = arith.constant 4 : index
    %c0_43 = arith.constant 0 : index
    %39 = vector.load %arg2[%c0_41, %c0_42, %c4, %c0_43] : memref<1x4x16x16xf32, #tpu.memory_space<vmem>>, vector<1x4x1x16xf32>
    %40 = vector.shape_cast %39 : vector<1x4x1x16xf32> to vector<4x16xf32>
    %c0_44 = arith.constant 0 : index
    %c0_45 = arith.constant 0 : index
    %c5 = arith.constant 5 : index
    %c0_46 = arith.constant 0 : index
    %41 = vector.load %arg2[%c0_44, %c0_45, %c5, %c0_46] : memref<1x4x16x16xf32, #tpu.memory_space<vmem>>, vector<1x4x1x16xf32>
    %42 = vector.shape_cast %41 : vector<1x4x1x16xf32> to vector<4x16xf32>
    %43 = tpu.concatenate %40, %42 in 0 : vector<4x16xf32>, vector<4x16xf32> -> vector<8x16xf32>
    %cst_47 = arith.constant dense<0.000000e+00> : vector<8x8xf32>
    %44 = tpu.matmul %43, %1, %cst_47 {dimension_numbers = #tpu.dot_dimension_numbers<[1], [0], [0], [1], [0, 0, 1, 1], [], []>} : vector<8x16xf32>, vector<16x8xf32>, vector<8x8xf32> -> vector<8x8xf32>
    %cst_48 = arith.constant dense<0.000000e+00> : vector<8x8xf32>
    %45 = tpu.matmul %43, %3, %cst_48 {dimension_numbers = #tpu.dot_dimension_numbers<[1], [0], [0], [1], [0, 0, 1, 1], [], []>} : vector<8x16xf32>, vector<16x8xf32>, vector<8x8xf32> -> vector<8x8xf32>
    %cst_49 = arith.constant dense<0.000000e+00> : vector<8x8xf32>
    %46 = tpu.matmul %5, %44, %cst_49 {dimension_numbers = #tpu.dot_dimension_numbers<[1], [0], [0], [1], [0, 0, 1, 1], [], []>} : vector<8x8xf32>, vector<8x8xf32>, vector<8x8xf32> -> vector<8x8xf32>
    %cst_50 = arith.constant dense<0.000000e+00> : vector<8x8xf32>
    %47 = tpu.matmul %7, %45, %cst_50 {dimension_numbers = #tpu.dot_dimension_numbers<[1], [0], [0], [1], [0, 0, 1, 1], [], []>} : vector<8x8xf32>, vector<8x8xf32>, vector<8x8xf32> -> vector<8x8xf32>
    %48 = arith.addf %46, %47 : vector<8x8xf32>
    %49 = vector.broadcast %8 : vector<8x1xf32> to vector<8x8xf32>
    %50 = arith.addf %48, %49 : vector<8x8xf32>
    %c0_51 = arith.constant 0 : index
    %c0_52 = arith.constant 0 : index
    %c2_53 = arith.constant 2 : index
    %c0_54 = arith.constant 0 : index
    %51 = vector.load %arg6[%c0_51, %c0_52, %c2_53, %c0_54] : memref<1x8x8x8xf32, #tpu.memory_space<vmem>>, vector<1x8x1x8xf32>
    %52 = vector.shape_cast %51 : vector<1x8x1x8xf32> to vector<8x8xf32>
    %53 = vector.shape_cast %50 : vector<8x8xf32> to vector<1x8x1x8xf32>
    tpu.vector_store %arg6[%c0_51, %c0_52, %c2_53, %c0_54], %53 {strides = array<i32>} : memref<1x8x8x8xf32, #tpu.memory_space<vmem>>, vector<1x8x1x8xf32>,
    %c0_55 = arith.constant 0 : index
    %c0_56 = arith.constant 0 : index
    %c6 = arith.constant 6 : index
    %c0_57 = arith.constant 0 : index
    %54 = vector.load %arg2[%c0_55, %c0_56, %c6, %c0_57] : memref<1x4x16x16xf32, #tpu.memory_space<vmem>>, vector<1x4x1x16xf32>
    %55 = vector.shape_cast %54 : vector<1x4x1x16xf32> to vector<4x16xf32>
    %c0_58 = arith.constant 0 : index
    %c0_59 = arith.constant 0 : index
    %c7 = arith.constant 7 : index
    %c0_60 = arith.constant 0 : index
    %56 = vector.load %arg2[%c0_58, %c0_59, %c7, %c0_60] : memref<1x4x16x16xf32, #tpu.memory_space<vmem>>, vector<1x4x1x16xf32>
    %57 = vector.shape_cast %56 : vector<1x4x1x16xf32> to vector<4x16xf32>
    %58 = tpu.concatenate %55, %57 in 0 : vector<4x16xf32>, vector<4x16xf32> -> vector<8x16xf32>
    %cst_61 = arith.constant dense<0.000000e+00> : vector<8x8xf32>
    %59 = tpu.matmul %58, %1, %cst_61 {dimension_numbers = #tpu.dot_dimension_numbers<[1], [0], [0], [1], [0, 0, 1, 1], [], []>} : vector<8x16xf32>, vector<16x8xf32>, vector<8x8xf32> -> vector<8x8xf32>
    %cst_62 = arith.constant dense<0.000000e+00> : vector<8x8xf32>
    %60 = tpu.matmul %58, %3, %cst_62 {dimension_numbers = #tpu.dot_dimension_numbers<[1], [0], [0], [1], [0, 0, 1, 1], [], []>} : vector<8x16xf32>, vector<16x8xf32>, vector<8x8xf32> -> vector<8x8xf32>
    %cst_63 = arith.constant dense<0.000000e+00> : vector<8x8xf32>
    %61 = tpu.matmul %5, %59, %cst_63 {dimension_numbers = #tpu.dot_dimension_numbers<[1], [0], [0], [1], [0, 0, 1, 1], [], []>} : vector<8x8xf32>, vector<8x8xf32>, vector<8x8xf32> -> vector<8x8xf32>
    %cst_64 = arith.constant dense<0.000000e+00> : vector<8x8xf32>
    %62 = tpu.matmul %7, %60, %cst_64 {dimension_numbers = #tpu.dot_dimension_numbers<[1], [0], [0], [1], [0, 0, 1, 1], [], []>} : vector<8x8xf32>, vector<8x8xf32>, vector<8x8xf32> -> vector<8x8xf32>
    %63 = arith.addf %61, %62 : vector<8x8xf32>
    %64 = vector.broadcast %8 : vector<8x1xf32> to vector<8x8xf32>
    %65 = arith.addf %63, %64 : vector<8x8xf32>
    %c0_65 = arith.constant 0 : index
    %c0_66 = arith.constant 0 : index
    %c3_67 = arith.constant 3 : index
    %c0_68 = arith.constant 0 : index
    %66 = vector.load %arg6[%c0_65, %c0_66, %c3_67, %c0_68] : memref<1x8x8x8xf32, #tpu.memory_space<vmem>>, vector<1x8x1x8xf32>
    %67 = vector.shape_cast %66 : vector<1x8x1x8xf32> to vector<8x8xf32>
    %68 = vector.shape_cast %65 : vector<8x8xf32> to vector<1x8x1x8xf32>
    tpu.vector_store %arg6[%c0_65, %c0_66, %c3_67, %c0_68], %68 {strides = array<i32>} : memref<1x8x8x8xf32, #tpu.memory_space<vmem>>, vector<1x8x1x8xf32>,
    %c0_69 = arith.constant 0 : index
    %c0_70 = arith.constant 0 : index
    %c8 = arith.constant 8 : index
    %c0_71 = arith.constant 0 : index
    %69 = vector.load %arg2[%c0_69, %c0_70, %c8, %c0_71] : memref<1x4x16x16xf32, #tpu.memory_space<vmem>>, vector<1x4x1x16xf32>
    %70 = vector.shape_cast %69 : vector<1x4x1x16xf32> to vector<4x16xf32>
    %c0_72 = arith.constant 0 : index
    %c0_73 = arith.constant 0 : index
    %c9 = arith.constant 9 : index
    %c0_74 = arith.constant 0 : index
    %71 = vector.load %arg2[%c0_72, %c0_73, %c9, %c0_74] : memref<1x4x16x16xf32, #tpu.memory_space<vmem>>, vector<1x4x1x16xf32>
    %72 = vector.shape_cast %71 : vector<1x4x1x16xf32> to vector<4x16xf32>
    %73 = tpu.concatenate %70, %72 in 0 : vector<4x16xf32>, vector<4x16xf32> -> vector<8x16xf32>
    %cst_75 = arith.constant dense<0.000000e+00> : vector<8x8xf32>
    %74 = tpu.matmul %73, %1, %cst_75 {dimension_numbers = #tpu.dot_dimension_numbers<[1], [0], [0], [1], [0, 0, 1, 1], [], []>} : vector<8x16xf32>, vector<16x8xf32>, vector<8x8xf32> -> vector<8x8xf32>
    %cst_76 = arith.constant dense<0.000000e+00> : vector<8x8xf32>
    %75 = tpu.matmul %73, %3, %cst_76 {dimension_numbers = #tpu.dot_dimension_numbers<[1], [0], [0], [1], [0, 0, 1, 1], [], []>} : vector<8x16xf32>, vector<16x8xf32>, vector<8x8xf32> -> vector<8x8xf32>
    %cst_77 = arith.constant dense<0.000000e+00> : vector<8x8xf32>
    %76 = tpu.matmul %5, %74, %cst_77 {dimension_numbers = #tpu.dot_dimension_numbers<[1], [0], [0], [1], [0, 0, 1, 1], [], []>} : vector<8x8xf32>, vector<8x8xf32>, vector<8x8xf32> -> vector<8x8xf32>
    %cst_78 = arith.constant dense<0.000000e+00> : vector<8x8xf32>
    %77 = tpu.matmul %7, %75, %cst_78 {dimension_numbers = #tpu.dot_dimension_numbers<[1], [0], [0], [1], [0, 0, 1, 1], [], []>} : vector<8x8xf32>, vector<8x8xf32>, vector<8x8xf32> -> vector<8x8xf32>
    %78 = arith.addf %76, %77 : vector<8x8xf32>
    %79 = vector.broadcast %8 : vector<8x1xf32> to vector<8x8xf32>
    %80 = arith.addf %78, %79 : vector<8x8xf32>
    %c0_79 = arith.constant 0 : index
    %c0_80 = arith.constant 0 : index
    %c4_81 = arith.constant 4 : index
    %c0_82 = arith.constant 0 : index
    %81 = vector.load %arg6[%c0_79, %c0_80, %c4_81, %c0_82] : memref<1x8x8x8xf32, #tpu.memory_space<vmem>>, vector<1x8x1x8xf32>
    %82 = vector.shape_cast %81 : vector<1x8x1x8xf32> to vector<8x8xf32>
    %83 = vector.shape_cast %80 : vector<8x8xf32> to vector<1x8x1x8xf32>
    tpu.vector_store %arg6[%c0_79, %c0_80, %c4_81, %c0_82], %83 {strides = array<i32>} : memref<1x8x8x8xf32, #tpu.memory_space<vmem>>, vector<1x8x1x8xf32>,
    %c0_83 = arith.constant 0 : index
    %c0_84 = arith.constant 0 : index
    %c10 = arith.constant 10 : index
    %c0_85 = arith.constant 0 : index
    %84 = vector.load %arg2[%c0_83, %c0_84, %c10, %c0_85] : memref<1x4x16x16xf32, #tpu.memory_space<vmem>>, vector<1x4x1x16xf32>
    %85 = vector.shape_cast %84 : vector<1x4x1x16xf32> to vector<4x16xf32>
    %c0_86 = arith.constant 0 : index
    %c0_87 = arith.constant 0 : index
    %c11 = arith.constant 11 : index
    %c0_88 = arith.constant 0 : index
    %86 = vector.load %arg2[%c0_86, %c0_87, %c11, %c0_88] : memref<1x4x16x16xf32, #tpu.memory_space<vmem>>, vector<1x4x1x16xf32>
    %87 = vector.shape_cast %86 : vector<1x4x1x16xf32> to vector<4x16xf32>
    %88 = tpu.concatenate %85, %87 in 0 : vector<4x16xf32>, vector<4x16xf32> -> vector<8x16xf32>
    %cst_89 = arith.constant dense<0.000000e+00> : vector<8x8xf32>
    %89 = tpu.matmul %88, %1, %cst_89 {dimension_numbers = #tpu.dot_dimension_numbers<[1], [0], [0], [1], [0, 0, 1, 1], [], []>} : vector<8x16xf32>, vector<16x8xf32>, vector<8x8xf32> -> vector<8x8xf32>
    %cst_90 = arith.constant dense<0.000000e+00> : vector<8x8xf32>
    %90 = tpu.matmul %88, %3, %cst_90 {dimension_numbers = #tpu.dot_dimension_numbers<[1], [0], [0], [1], [0, 0, 1, 1], [], []>} : vector<8x16xf32>, vector<16x8xf32>, vector<8x8xf32> -> vector<8x8xf32>
    %cst_91 = arith.constant dense<0.000000e+00> : vector<8x8xf32>
    %91 = tpu.matmul %5, %89, %cst_91 {dimension_numbers = #tpu.dot_dimension_numbers<[1], [0], [0], [1], [0, 0, 1, 1], [], []>} : vector<8x8xf32>, vector<8x8xf32>, vector<8x8xf32> -> vector<8x8xf32>
    %cst_92 = arith.constant dense<0.000000e+00> : vector<8x8xf32>
    %92 = tpu.matmul %7, %90, %cst_92 {dimension_numbers = #tpu.dot_dimension_numbers<[1], [0], [0], [1], [0, 0, 1, 1], [], []>} : vector<8x8xf32>, vector<8x8xf32>, vector<8x8xf32> -> vector<8x8xf32>
    %93 = arith.addf %91, %92 : vector<8x8xf32>
    %94 = vector.broadcast %8 : vector<8x1xf32> to vector<8x8xf32>
    %95 = arith.addf %93, %94 : vector<8x8xf32>
    %c0_93 = arith.constant 0 : index
    %c0_94 = arith.constant 0 : index
    %c5_95 = arith.constant 5 : index
    %c0_96 = arith.constant 0 : index
    %96 = vector.load %arg6[%c0_93, %c0_94, %c5_95, %c0_96] : memref<1x8x8x8xf32, #tpu.memory_space<vmem>>, vector<1x8x1x8xf32>
    %97 = vector.shape_cast %96 : vector<1x8x1x8xf32> to vector<8x8xf32>
    %98 = vector.shape_cast %95 : vector<8x8xf32> to vector<1x8x1x8xf32>
    tpu.vector_store %arg6[%c0_93, %c0_94, %c5_95, %c0_96], %98 {strides = array<i32>} : memref<1x8x8x8xf32, #tpu.memory_space<vmem>>, vector<1x8x1x8xf32>,
    %c0_97 = arith.constant 0 : index
    %c0_98 = arith.constant 0 : index
    %c12 = arith.constant 12 : index
    %c0_99 = arith.constant 0 : index
    %99 = vector.load %arg2[%c0_97, %c0_98, %c12, %c0_99] : memref<1x4x16x16xf32, #tpu.memory_space<vmem>>, vector<1x4x1x16xf32>
    %100 = vector.shape_cast %99 : vector<1x4x1x16xf32> to vector<4x16xf32>
    %c0_100 = arith.constant 0 : index
    %c0_101 = arith.constant 0 : index
    %c13 = arith.constant 13 : index
    %c0_102 = arith.constant 0 : index
    %101 = vector.load %arg2[%c0_100, %c0_101, %c13, %c0_102] : memref<1x4x16x16xf32, #tpu.memory_space<vmem>>, vector<1x4x1x16xf32>
    %102 = vector.shape_cast %101 : vector<1x4x1x16xf32> to vector<4x16xf32>
    %103 = tpu.concatenate %100, %102 in 0 : vector<4x16xf32>, vector<4x16xf32> -> vector<8x16xf32>
    %cst_103 = arith.constant dense<0.000000e+00> : vector<8x8xf32>
    %104 = tpu.matmul %103, %1, %cst_103 {dimension_numbers = #tpu.dot_dimension_numbers<[1], [0], [0], [1], [0, 0, 1, 1], [], []>} : vector<8x16xf32>, vector<16x8xf32>, vector<8x8xf32> -> vector<8x8xf32>
    %cst_104 = arith.constant dense<0.000000e+00> : vector<8x8xf32>
    %105 = tpu.matmul %103, %3, %cst_104 {dimension_numbers = #tpu.dot_dimension_numbers<[1], [0], [0], [1], [0, 0, 1, 1], [], []>} : vector<8x16xf32>, vector<16x8xf32>, vector<8x8xf32> -> vector<8x8xf32>
    %cst_105 = arith.constant dense<0.000000e+00> : vector<8x8xf32>
    %106 = tpu.matmul %5, %104, %cst_105 {dimension_numbers = #tpu.dot_dimension_numbers<[1], [0], [0], [1], [0, 0, 1, 1], [], []>} : vector<8x8xf32>, vector<8x8xf32>, vector<8x8xf32> -> vector<8x8xf32>
    %cst_106 = arith.constant dense<0.000000e+00> : vector<8x8xf32>
    %107 = tpu.matmul %7, %105, %cst_106 {dimension_numbers = #tpu.dot_dimension_numbers<[1], [0], [0], [1], [0, 0, 1, 1], [], []>} : vector<8x8xf32>, vector<8x8xf32>, vector<8x8xf32> -> vector<8x8xf32>
    %108 = arith.addf %106, %107 : vector<8x8xf32>
    %109 = vector.broadcast %8 : vector<8x1xf32> to vector<8x8xf32>
    %110 = arith.addf %108, %109 : vector<8x8xf32>
    %c0_107 = arith.constant 0 : index
    %c0_108 = arith.constant 0 : index
    %c6_109 = arith.constant 6 : index
    %c0_110 = arith.constant 0 : index
    %111 = vector.load %arg6[%c0_107, %c0_108, %c6_109, %c0_110] : memref<1x8x8x8xf32, #tpu.memory_space<vmem>>, vector<1x8x1x8xf32>
    %112 = vector.shape_cast %111 : vector<1x8x1x8xf32> to vector<8x8xf32>
    %113 = vector.shape_cast %110 : vector<8x8xf32> to vector<1x8x1x8xf32>
    tpu.vector_store %arg6[%c0_107, %c0_108, %c6_109, %c0_110], %113 {strides = array<i32>} : memref<1x8x8x8xf32, #tpu.memory_space<vmem>>, vector<1x8x1x8xf32>,
    %c0_111 = arith.constant 0 : index
    %c0_112 = arith.constant 0 : index
    %c14 = arith.constant 14 : index
    %c0_113 = arith.constant 0 : index
    %114 = vector.load %arg2[%c0_111, %c0_112, %c14, %c0_113] : memref<1x4x16x16xf32, #tpu.memory_space<vmem>>, vector<1x4x1x16xf32>
    %115 = vector.shape_cast %114 : vector<1x4x1x16xf32> to vector<4x16xf32>
    %c0_114 = arith.constant 0 : index
    %c0_115 = arith.constant 0 : index
    %c15 = arith.constant 15 : index
    %c0_116 = arith.constant 0 : index
    %116 = vector.load %arg2[%c0_114, %c0_115, %c15, %c0_116] : memref<1x4x16x16xf32, #tpu.memory_space<vmem>>, vector<1x4x1x16xf32>
    %117 = vector.shape_cast %116 : vector<1x4x1x16xf32> to vector<4x16xf32>
    %118 = tpu.concatenate %115, %117 in 0 : vector<4x16xf32>, vector<4x16xf32> -> vector<8x16xf32>
    %cst_117 = arith.constant dense<0.000000e+00> : vector<8x8xf32>
    %119 = tpu.matmul %118, %1, %cst_117 {dimension_numbers = #tpu.dot_dimension_numbers<[1], [0], [0], [1], [0, 0, 1, 1], [], []>} : vector<8x16xf32>, vector<16x8xf32>, vector<8x8xf32> -> vector<8x8xf32>
    %cst_118 = arith.constant dense<0.000000e+00> : vector<8x8xf32>
    %120 = tpu.matmul %118, %3, %cst_118 {dimension_numbers = #tpu.dot_dimension_numbers<[1], [0], [0], [1], [0, 0, 1, 1], [], []>} : vector<8x16xf32>, vector<16x8xf32>, vector<8x8xf32> -> vector<8x8xf32>
    %cst_119 = arith.constant dense<0.000000e+00> : vector<8x8xf32>
    %121 = tpu.matmul %5, %119, %cst_119 {dimension_numbers = #tpu.dot_dimension_numbers<[1], [0], [0], [1], [0, 0, 1, 1], [], []>} : vector<8x8xf32>, vector<8x8xf32>, vector<8x8xf32> -> vector<8x8xf32>
    %cst_120 = arith.constant dense<0.000000e+00> : vector<8x8xf32>
    %122 = tpu.matmul %7, %120, %cst_120 {dimension_numbers = #tpu.dot_dimension_numbers<[1], [0], [0], [1], [0, 0, 1, 1], [], []>} : vector<8x8xf32>, vector<8x8xf32>, vector<8x8xf32> -> vector<8x8xf32>
    %123 = arith.addf %121, %122 : vector<8x8xf32>
    %124 = vector.broadcast %8 : vector<8x1xf32> to vector<8x8xf32>
    %125 = arith.addf %123, %124 : vector<8x8xf32>
    %c0_121 = arith.constant 0 : index
    %c0_122 = arith.constant 0 : index
    %c7_123 = arith.constant 7 : index
    %c0_124 = arith.constant 0 : index
    %126 = vector.load %arg6[%c0_121, %c0_122, %c7_123, %c0_124] : memref<1x8x8x8xf32, #tpu.memory_space<vmem>>, vector<1x8x1x8xf32>
    %127 = vector.shape_cast %126 : vector<1x8x1x8xf32> to vector<8x8xf32>
    %128 = vector.shape_cast %125 : vector<8x8xf32> to vector<1x8x1x8xf32>
    tpu.vector_store %arg6[%c0_121, %c0_122, %c7_123, %c0_124], %128 {strides = array<i32>} : memref<1x8x8x8xf32, #tpu.memory_space<vmem>>, vector<1x8x1x8xf32>,
    return
  }
  func.func @transform_0(%arg0: i32, %arg1: i32) -> (i32, i32, i32, i32) {
    %c0_i32 = arith.constant 0 : i32
    %c0_i32_0 = arith.constant 0 : i32
    %c0_i32_1 = arith.constant 0 : i32
    return %arg0, %c0_i32, %arg1, %c0_i32_0 : i32, i32, i32, i32
  }
  func.func @transform_1(%arg0: i32, %arg1: i32) -> (i32, i32, i32) {
    %c0_i32 = arith.constant 0 : i32
    %c0_i32_0 = arith.constant 0 : i32
    %c0_i32_1 = arith.constant 0 : i32
    %c0_i32_2 = arith.constant 0 : i32
    return %c0_i32, %c0_i32_0, %c0_i32_1 : i32, i32, i32
  }
  func.func @transform_2(%arg0: i32, %arg1: i32) -> (i32, i32, i32) {
    %c0_i32 = arith.constant 0 : i32
    %c0_i32_0 = arith.constant 0 : i32
    %c0_i32_1 = arith.constant 0 : i32
    %c0_i32_2 = arith.constant 0 : i32
    return %c0_i32, %c0_i32_0, %c0_i32_1 : i32, i32, i32
  }
  func.func @transform_3(%arg0: i32, %arg1: i32) -> (i32, i32) {
    %c0_i32 = arith.constant 0 : i32
    %c0_i32_0 = arith.constant 0 : i32
    %c0_i32_1 = arith.constant 0 : i32
    return %c0_i32, %c0_i32_0 : i32, i32
  }
  func.func @transform_4(%arg0: i32, %arg1: i32) -> (i32, i32, i32, i32) {
    %c0_i32 = arith.constant 0 : i32
    %c0_i32_0 = arith.constant 0 : i32
    %c0_i32_1 = arith.constant 0 : i32
    return %arg0, %c0_i32, %arg1, %c0_i32_0 : i32, i32, i32, i32
  }
}

</mosaic_0001>

<bundles_post_ra>
// kernel: tpu_custom_call.1
= control target key start
LH: loop header
LB: loop body
LE: loop exit
PB: predicated region body
PF: predicated region fallthrough
CT: control target
= control target key end

     0   :  { %9 = vsyncpa [#allocation3], 0  ;;  %s4697_s0 = inlined_call_operand.hbm [shape: f32[2,4,16,16], index: 0, kind: input, shape index: {}]   ;;  %s4698_s1 = inlined_call_operand.vmem [shape: f32[2,16,8], index: 1, kind: input, shape index: {}]   ;;  %s4699_s2 = inlined_call_operand.vmem [shape: f32[2,8,8], index: 2, kind: input, shape index: {}]   ;;  %s4700_s3 = inlined_call_operand.vmem [shape: f32[8,1], index: 3, kind: input, shape index: {}]   ;;  %s4701_s4 = inlined_call_operand.hbm [shape: f32[2,8,8,8], index: 4, kind: output, shape index: {}]  }
   0x1   :  { %11 = vsyncpa [#allocation3 + $0x1], 0 }
   0x2   :  { %12 = vsyncpa [#allocation4], 0 }
   0x3   :  { %14 = vsyncpa [#allocation4 + $0x1], 0  ;;  %s4016_s15 = smov 0   ;;  %s4018_s16 = smov 0  }
   0x4   :  { %s4020_s17 = smov 0   ;;  %s4022_s18 = smov 0  }
   0x5   :  { %s4024_s19 = smov 0   ;;  %s4026_s20 = smov 0  }
   0x6 LB: > { %s3422_s21 = sadd.s32 4294967295, %s3978_s20   ;;  %s3423_s22 = sadd.s32 4294967294, %s3978_s20   ;;  %s3978_s20 = sphi %s4026_s20, %s20_s20   ;;  %s3974_s19 = sphi %s4024_s19, %s4716_s19   ;;  %s3970_s18 = sphi %s4022_s18, %s4715_s18   ;;  %s3966_s17 = sphi %s4020_s17, %s4714_s17   ;;  %s3962_s16 = sphi %s4018_s16, %s4713_s16   ;;  %s3958_s15 = sphi %s4016_s15, %s4712_s15  }
   0x7   : > { %s32_s23 = sadd.s32 1, %s3974_s19  ;;  %s41_s24 = sadd.s32 1, %s3966_s17 }
   0x8   : > { %p34_p0 = scmp.ge.s32.totalorder %s32_s23, 2  ;;  %p48_p1 = scmp.ne.s32.totalorder %s3966_s17, %s3962_s16 }
   0x9   : > { %p49_p2 = scmp.eq.s32.totalorder %s3978_s20, 0  ;;  %p54_p3 = scmp.ne.s32.totalorder %s3962_s16, %s3958_s15 }
   0xa   : > { %s4718_s23 = smov (%p34_p0, %s32_s23), 0  ;;  %p55_p5 = scmp.eq.s32.totalorder %s3422_s21, 0 }
   0xb   : > { %p4057_p4 = por %p49_p2, %p48_p1  ;;  %s36_s26 = ssub.s32 %s3974_s19, %s4718_s23 }
   0xc   : > { %p143_p6 = scmp.eq.s32.totalorder %s3422_s21, 1  ;;  %p39_p7 = scmp.eq.s32.totalorder %s36_s26, 0 }
   0xd   : > { %p4063_p8 = por %p55_p5, %p54_p3  ;;  %p149_p10 = scmp.eq.s32.totalorder %s3423_s22, 1 }
   0xe   : > { %p4067_p9 = por %p143_p6, %p48_p1  ;;  %p3806_p13 = scmp.lt.s32.totalorder %s3978_s20, 2 }
   0xf   : > { %s4072_s29 = scalar_select %p39_p7, %s3966_s17, %s41_s24  }
  0x10   : > { %s4705_s28 = scalar_select %p4067_p9, 1, 0 }
  0x11   : > { %p4074_p11 = por %p149_p10, %p54_p3  ;;  %s178_s5 = sand.u32 1, %s3966_s17  }
  0x12   : > { %s3426_s6 = sshll.u32 %s178_s5, 6  ;;  %s3472_s7 = sshll.u32 %s3974_s19, 10 }
  0x13   : > { %s4706_s30 = scalar_select %p4074_p11, 1, 0 }
  0x14   : > { %s4085_s10 = scalar_lea.hbm %s4697_s0, %s3472_s7  ;;  %s182_s11 = scalar_lea.vmem [#allocation2], %s3426_s6 }
  0x15   : > { %s191_s12 = sshll.u32 %s182_s11, 4  ;;  %p4091_p0 = pnand %p3806_p13, %p4057_p4  ;;  %s4087_s12 = int_to_ptr.vmem [resolvable:$true] %s191_s12 }
  0x16   : > { %s4096_s14 = scalar_lea.sflag [#allocation3], %s178_s5  ;;  %s3866_s21 = scalar_lea.hbm %s4085_s10, 1024 }
  0x17   : > { %p3867_p2 = scmp.ne.s32.totalorder %s4085_s10, %s3866_s21  ;;  %p3868_p3 = pneg %p4091_p0 }
  0x18   : > { %s3871_s25 = scalar_lea.hbm %s4697_s0, 2048  ;;  %p3872_p4 = scmp.lt.u32.totalorder %s4085_s10, %s4697_s0 }
  0x19   : > { %p3869_p5 = pnand %p3868_p3, %p3867_p2  ;;  %p3873_p7 = scmp.lt.u32.totalorder %s3871_s25, %s3866_s21 }
  0x1a   : > { %p3875_p13 = scmp.lt.u32.totalorder %s3866_s21, %s4085_s10 }
  0x1b   : > { %p3870_p6 = pneg %p3869_p5  ;;  %p3874_p10 = por %p3873_p7, %p3872_p4 }
  0x1d   : > { %p3876_p12 = por %p3875_p13, %p3874_p10 }
  0x1f   : > { %p3877_p1 = pnand %p3876_p12, %p3870_p6 }
  0x21   : > { %3880 = shalt.err (!%p3877_p1)
}
  0x22   : > { %s3881_s5 = scalar_lea.vmem %s4087_s12, 1024  ;;  %s3980_s7 = smov [#allocation2]  }
  0x23   : > { %p3882_p2 = scmp.ne.s32.totalorder %s4087_s12, %s3881_s5  ;;  %s3886_s8 = sshll.u32 %s3980_s7, 4  ;;  %s3887_s8 = int_to_ptr.vmem [resolvable:$false] %s3886_s8 }
  0x24   : > { %s3888_s9 = scalar_lea.vmem %s3887_s8, 2048  ;;  %p3889_p9 = scmp.lt.s32.totalorder %s4087_s12, %s3887_s8 }
  0x25   : > { %p3884_p5 = pnand %p3882_p2, %p3868_p3  ;;  %p3890_p4 = scmp.lt.s32.totalorder %s3888_s9, %s3881_s5 }
  0x27   : > { %p3885_p11 = pneg %p3884_p5  ;;  %p3891_p7 = por %p3890_p4, %p3889_p9 }
  0x29   : > { %p3892_p10 = pnand %p3891_p7, %p3885_p11 }
  0x2b   : > { %3895 = shalt.err (!%p3892_p10)
}
  0x2c   : > { %s3981_s11 = smov 128   ;;  %s3982_s21 = smov 8  }
  0x2d   : > { %3801 = dma.hbm_to_vmem [thread:$0]  (!%p4091_p0), %s4085_s10, 1024, %s4087_s12, %s4096_s14, %s3981_s11, %s3981_s11, %s3982_s21  }
  0x2e   : > { %p199_p12 = scmp.lt.s32.totalorder %s3978_s20, 3  ;;  %p4708_p1 = scmp.ge.s32.totalorder %s3978_s20, 1 }
  0x30   : > { %p200_p3 = pnand %p4708_p1, %p199_p12 }
  0x31   : > { %s4128_s22 = sand.u32 (!%p200_p3), 1, %s3962_s16  }
  0x32   : > { %203 = sbr.rel (%p200_p3) target bundleno = 2055 (0x807), region = 36  ;;  %s3430_s24 = sshll.u32 (!%p200_p3), %s4128_s22, 6 }
  0x33   : > { %s206_s25 = scalar_lea.sflag (!%p200_p3), [#allocation3], %s4128_s22  ;;  %s4134_s26 = scalar_lea.vmem (!%p200_p3), [#allocation2], %s3430_s24 }
  0x39   : > { %3949 = dma.done.wait (%p4063_p8), %s206_s25, 1024  }
  0x3a   : > { %3951 = vsyncadd (%p4063_p8), %s206_s25, 4294966272  ;;  %v3983_v0 = vmov 0.0|0.0   ;;  %vm3984_vm0 = vmmov 0   ;;  %v3985_v1 = vmov 0.0   ;;  %v235_v2 = vld [vmem:[%s4698_s1] sm:$0xff]  ;;  %v236_v3 = vld [vmem:[%s4698_s1 + $0x8] sm:$0xff] }
  0x3b   : > { %3746 = vmatprep.subr.bf16.mxu0 %v3983_v0  ;;  %3749 = vmatprep.subr.bf16.mxu1 %v3983_v0  ;;  %v3432_v4 = vld [vmem:[%s4698_s1 + $0x10] sm:$0xff]  ;;  %vm257_vm1 = vcmask 1041409   ;;  %vm260_vm2 = vcmask 1042434   ;;  %vm263_vm3 = vcmask 1043459   ;;  %v4155_v5 = vpack.c.bf16 %v236_v3, %v235_v2  ;;  %v3433_v6 = vld [vmem:[%s4698_s1 + $0x18] sm:$0xff]  ;;  %v243_v30 = vld [vmem:[%s4700_s3] sm:$0xff] }
  0x3c   : > { %3558 = vmatprep.mubr.msk.f32.mxu0 %vm3984_vm0, %v3985_v1  ;;  %3565 = vmatprep.mubr.msk.f32.mxu1 %vm3984_vm0, %v3985_v1  ;;  %v244_v7 = vld [vmem:[%s4134_s26] sm:$0x1]  ;;  %v245_v8 = vld [vmem:[%s4134_s26 + $0x10] sm:$0x1]  ;;  %vm272_vm4 = vcmask 1045509   ;;  %v4162_v9 = vpack.c.bf16 %v3433_v6, %v3432_v4  ;;  %vm275_vm5 = vcmask 1046534   ;;  %v585_v3 = vlaneseq }
  0x3d   : > { %v246_v10 = vld [vmem:[%s4134_s26 + $0x20] sm:$0x1]  ;;  %v247_v11 = vld [vmem:[%s4134_s26 + $0x30] sm:$0x1]  ;;  %v248_v12 = vld [vmem:[%s4134_s26 + $0x1] sm:$0x1]  ;;  %3748 = vmatpush3.bf16.msra.mxu0 %v4155_v5 }
  0x3e   : > { %v249_v13 = vld [vmem:[%s4134_s26 + $0x11] sm:$0x1]  ;;  %v250_v14 = vld [vmem:[%s4134_s26 + $0x21] sm:$0x1]  ;;  %3751 = vmatpush3.bf16.msra.mxu1 %v4162_v9  ;;  %v256_v16 = vrot.slane %v245_v8, 7  ;;  %v259_v17 = vrot.slane %v246_v10, 6  ;;  %3568 = vmatprep.subr.mxu0 %v3985_v1 }
  0x3f   : > { %v251_v15 = vld [vmem:[%s4134_s26 + $0x31] sm:$0x1]  ;;  %v262_v18 = vrot.slane %v247_v11, 5  ;;  %v270_v19 = vrot.slane %v248_v12, 4  ;;  %v271_v20 = vrot.slane %v249_v13, 3  ;;  %v274_v21 = vrot.slane %v250_v14, 2  ;;  %3573 = vmatprep.subr.mxu1 %v3985_v1 }
  0x40   : > { %v277_v22 = vrot.slane %v251_v15, 1  ;;  %v258_v23 = vsel %vm257_vm1, %v256_v16, %v244_v7  ;;  %vm278_vm6 = vcmask 1047559   ;;  %vm281_vm7 = vcmask 1043456   ;;  %v648_v32 = vld [vmem:[%s4134_s26 + $0x12] sm:$0x1]  ;;  %v4205_v51 = vld [vmem:[%s4699_s2 + $0x8] sm:$0xff] }
  0x41   : > { %v261_v24 = vsel %vm260_vm2, %v259_v17, %v258_v23  ;;  %v273_v25 = vsel %vm272_vm4, %v271_v20, %v270_v19  ;;  %vm283_vm8 = vcmask 130048   ;;  %v3986_v31 = vmov 0   ;;  %v651_v33 = vld [vmem:[%s4134_s26 + $0x3] sm:$0x1]  ;;  %v652_v34 = vld [vmem:[%s4134_s26 + $0x13] sm:$0x1] }
  0x42   : > { %v264_v26 = vsel %vm263_vm3, %v262_v18, %v261_v24  ;;  %v276_v27 = vsel %vm275_vm5, %v274_v21, %v273_v25  ;;  %3865 = vset.pattern.permute.xlu0 %v3986_v31  ;;  %v649_v35 = vld [vmem:[%s4134_s26 + $0x22] sm:$0x1]  ;;  %v653_v36 = vld [vmem:[%s4134_s26 + $0x23] sm:$0x1]  ;;  %v659_v37 = vrot.slane %v648_v32, 7  ;;  %v670_v38 = vrot.slane %v651_v33, 4 }
  0x43   : > { %v279_v28 = vsel %vm278_vm6, %v277_v22, %v276_v27  ;;  %576 = vperm.xlu0 %3865, %v243_v30   ;;  %v671_v39 = vrot.slane %v652_v34, 3  ;;  %v647_v40 = vld [vmem:[%s4134_s26 + $0x2] sm:$0x1]  ;;  %v650_v41 = vld [vmem:[%s4134_s26 + $0x32] sm:$0x1]  ;;  %v661_v43 = vrot.slane %v649_v35, 6 }
  0x44   : > { %v282_v29 = vsel %vm281_vm7, %v264_v26, %v279_v28  ;;  %v654_v42 = vld [vmem:[%s4134_s26 + $0x33] sm:$0x1]  ;;  %v673_v44 = vrot.slane %v653_v36, 2  ;;  %v660_v45 = vsel %vm257_vm1, %v659_v37, %v647_v40  ;;  %v663_v47 = vrot.slane %v650_v41, 5  ;;  %v4210_v52 = vld [vmem:[%s4699_s2] sm:$0xff]  ;;  %s4268_s10 = scalar_lea.vmem [#allocation5], %s3430_s24 }
  0x45   : > { %3559 = vmatmul.mubr.msk.f32.vlgmr.msra.gmra.mrb[0].mxu0 %vm283_vm8, %v282_v29  ;;  %3566 = vmatmul.mubr.msk.f32.vlgmr.msra.gmra.mrb[0].mxu1 %vm283_vm8, %v282_v29  ;;  %v672_v46 = vsel %vm272_vm4, %v671_v39, %v670_v38  ;;  %v675_v48 = vrot.slane %v654_v42, 1  ;;  %v662_v49 = vsel %vm260_vm2, %v661_v43, %v660_v45  ;;  %vm427_vm9 = vcmask 64512   ;;  %v1030_v60 = vld [vmem:[%s4134_s26 + $0x14] sm:$0x1]  ;;  %v1033_v61 = vld [vmem:[%s4134_s26 + $0x5] sm:$0x1] }
  0x46   : > { %3570 = vmatprep.mubr.msk.f32.mxu0 %vm3984_vm0, %v3985_v1  ;;  %3575 = vmatprep.mubr.msk.f32.mxu1 %vm3984_vm0, %v3985_v1  ;;  %v674_v50 = vsel %vm275_vm5, %v673_v44, %v672_v46  ;;  %v664_v57 = vsel %vm263_vm3, %v663_v47, %v662_v49  ;;  %v1034_v62 = vld [vmem:[%s4134_s26 + $0x15] sm:$0x1]  ;;  %v3987_v63 = vmov 1966171168   ;;  %v1031_v4 = vld [vmem:[%s4134_s26 + $0x24] sm:$0x1] }
  0x47   : > { %v676_v58 = vsel %vm278_vm6, %v675_v48, %v674_v50  ;;  %v583_v2 = vunpack.c.l.s4 %v3987_v63  ;;  %v1035_v6 = vld [vmem:[%s4134_s26 + $0x25] sm:$0x1]  ;;  %v1041_v7 = vrot.slane %v1030_v60, 7  ;;  %v1052_v8 = vrot.slane %v1033_v61, 4  ;;  %v1029_v11 = vld [vmem:[%s4134_s26 + $0x4] sm:$0x1] }
  0x48   : > { %v678_v59 = vsel %vm281_vm7, %v664_v57, %v676_v58  ;;  %v1053_v10 = vrot.slane %v1034_v62, 3  ;;  %v586_v13 = vshrl.u32 %v585_v3, 7  ;;  %v1032_v14 = vld [vmem:[%s4134_s26 + $0x34] sm:$0x1]  ;;  %v1036_v15 = vld [vmem:[%s4134_s26 + $0x35] sm:$0x1] }
  0x49   : > { %v584_v12 = vunpack.c.0.s8 %v583_v2  ;;  %v1043_v16 = vrot.slane %v1031_v4, 6  ;;  %v1055_v17 = vrot.slane %v1035_v6, 2  ;;  %v1042_v19 = vsel %vm257_vm1, %v1041_v7, %v1029_v11  ;;  %v1413_v57 = vld [vmem:[%s4134_s26 + $0x26] sm:$0x1]  ;;  %v1417_v58 = vld [vmem:[%s4134_s26 + $0x27] sm:$0x1] }
  0x4a   : > { %v1054_v20 = vsel %vm272_vm4, %v1053_v10, %v1052_v8  ;;  %v1045_v27 = vrot.slane %v1032_v14, 5  ;;  %v1057_v28 = vrot.slane %v1036_v15, 1  ;;  %vm638_vm10 = vcmask 57344   ;;  %v1411_v62 = vld [vmem:[%s4134_s26 + $0x6] sm:$0x1]  ;;  %s3473_s24 = sshll.u32 %s3970_s18, 10 }
  0x4b   : > { %v4247_v26 = vsub.s32 %v584_v12, %v586_v13  ;;  %v1044_v29 = vsel %vm260_vm2, %v1043_v16, %v1042_v19  ;;  %v1056_v30 = vsel %vm275_vm5, %v1055_v17, %v1054_v20  ;;  %v1414_v63 = vld [vmem:[%s4134_s26 + $0x36] sm:$0x1]  ;;  %v1418_v2 = vld [vmem:[%s4134_s26 + $0x37] sm:$0x1]  ;;  %v1425_v3 = vrot.slane %v1413_v57, 6  ;;  %s4638_s14 = scalar_lea.hbm %s4701_s4, %s3473_s24  ;;  %s3322_s18 = scalar_lea.sflag [#allocation4], %s4128_s22 }
  0x4c   : > { %v1046_v36 = vsel %vm263_vm3, %v1045_v27, %v1044_v29  ;;  %v1058_v37 = vsel %vm278_vm6, %v1057_v28, %v1056_v30  ;;  %v1437_v4 = vrot.slane %v1417_v58, 2  ;;  %v1427_v14 = vrot.slane %v1414_v63, 5  ;;  %p4709_p9 = scmp.ne.s32.totalorder %s4705_s28, 0  ;;  %s3988_s5 = smov [#allocation5]  }
  0x4d   : > { %v1060_v43 = vsel %vm281_vm7, %v1046_v36, %v1058_v37  ;;  %v1439_v15 = vrot.slane %v1418_v2, 1  ;;  %s3900_s7 = sshll.u32 %s3988_s5, 4  ;;  %s3901_s7 = int_to_ptr.vmem [resolvable:$false] %s3900_s7 }
  0x4e   : > { %s3902_s8 = scalar_lea.vmem %s3901_s7, 2048 }
  0xc2   : > { %v4243_v18 = vpop.permute.xlu0 %576 }
 0x118   : > { %v353_v53 = vpop.f32.mrb[0].mxu0  ;;  %v423_v54 = vpop.f32.mrb[0].mxu1 }
 0x119   : > { %v3560_v55 = vpop.f32.mrb[1].mxu0  ;;  %v3567_v56 = vpop.f32.mrb[1].mxu1  ;;  %3569 = vmatpush3.msra.mxu0 %v423_v54  ;;  %3574 = vmatpush3.msra.mxu1 %v353_v53  ;;  %v1412_v54 = vld [vmem:[%s4134_s26 + $0x16] sm:$0x1] }
 0x11a   : > { %3571 = vmatmul.mubr.msk.f32.vlgmr.msra.gmra.mrb[2].mxu0 %vm427_vm9, %v4205_v51  ;;  %3576 = vmatmul.mubr.msk.f32.vlgmr.msra.gmra.mrb[2].mxu1 %vm427_vm9, %v4210_v52  ;;  %v1415_v55 = vld [vmem:[%s4134_s26 + $0x7] sm:$0x1]  ;;  %v1416_v56 = vld [vmem:[%s4134_s26 + $0x17] sm:$0x1] }
 0x11b   : > { %3752 = vmatprep.subr.bf16.mxu0 %v3983_v0  ;;  %3755 = vmatprep.subr.bf16.mxu1 %v3983_v0  ;;  %v1434_v60 = vrot.slane %v1415_v55, 4  ;;  %v1435_v61 = vrot.slane %v1416_v56, 3 }
 0x11c   : > { %3754 = vmatpush3.bf16.msra.mxu0 %v4155_v5  ;;  %3757 = vmatpush3.bf16.msra.mxu1 %v4162_v9 }
 0x11d   : > { %3582 = vmatprep.mubr.msk.f32.mxu0 %vm3984_vm0, %v3985_v1  ;;  %3589 = vmatprep.mubr.msk.f32.mxu1 %vm3984_vm0, %v3985_v1  ;;  %v1436_v10 = vsel %vm272_vm4, %v1435_v61, %v1434_v60 }
 0x11e   : > { %3592 = vmatprep.subr.mxu0 %v3985_v1  ;;  %3597 = vmatprep.subr.mxu1 %v3985_v1  ;;  %v1438_v19 = vsel %vm275_vm5, %v1437_v4, %v1436_v10 }
 0x11f   : > { %3583 = vmatmul.mubr.msk.f32.vlgmr.msra.gmra.mrb[4].mxu0 %vm283_vm8, %v678_v59  ;;  %3590 = vmatmul.mubr.msk.f32.vlgmr.msra.gmra.mrb[4].mxu1 %vm283_vm8, %v678_v59  ;;  %v1423_v59 = vrot.slane %v1412_v54, 7  ;;  %v1440_v27 = vsel %vm278_vm6, %v1439_v15, %v1438_v19 }
 0x120   : > { %3594 = vmatprep.mubr.msk.f32.mxu0 %vm3984_vm0, %v3985_v1  ;;  %3599 = vmatprep.mubr.msk.f32.mxu1 %vm3984_vm0, %v3985_v1 }
 0x121   : > { %v1424_v8 = vsel %vm257_vm1, %v1423_v59, %v1411_v62 }
 0x122   : > { %v1426_v17 = vsel %vm260_vm2, %v1425_v3, %v1424_v8 }
 0x1ed   : > { %v497_v21 = vpop.f32.mrb[2].mxu0  ;;  %v570_v22 = vpop.f32.mrb[2].mxu1 }
 0x1ee   : > { %v571_v23 = vadd.f32 %v570_v22, %v497_v21  ;;  %v3572_v24 = vpop.f32.mrb[3].mxu0  ;;  %v3577_v25 = vpop.f32.mrb[3].mxu1 }
 0x1ef   : > { %v1428_v25 = vsel %vm263_vm3, %v1427_v14, %v1426_v17 }
 0x1f0   : > { %v579_v31 = vadd.f32 %v4243_v18, %v571_v23  ;;  %v1442_v36 = vsel %vm281_vm7, %v1428_v25, %v1440_v27 }
 0x1f2   : > { %v581_v32 = vcombine.high %v579_v31, %v579_v31  ;;  %v588_v33 = vrot.slane %v579_v31, %v4247_v26  ;;  %v748_v34 = vpop.f32.mrb[4].mxu0  ;;  %v818_v35 = vpop.f32.mrb[4].mxu1 }
 0x1f3   : > { %v3584_v38 = vpop.f32.mrb[5].mxu0  ;;  %v3591_v39 = vpop.f32.mrb[5].mxu1  ;;  %3593 = vmatpush3.msra.mxu0 %v818_v35  ;;  %3598 = vmatpush3.msra.mxu1 %v748_v34 }
 0x1f4   : > { %v595_v40 = vrot.slane %v581_v32, %v4247_v26  ;;  %v596_v41 = vcombine.high %v588_v33, %v588_v33  ;;  %v604_v42 = vrot.slane %v588_v33, %v4247_v26  ;;  %3595 = vmatmul.mubr.msk.f32.vlgmr.msra.gmra.mrb[6].mxu0 %vm427_vm9, %v4205_v51  ;;  %3600 = vmatmul.mubr.msk.f32.vlgmr.msra.gmra.mrb[6].mxu1 %vm427_vm9, %v4210_v52 }
 0x1f5   : > { %3758 = vmatprep.subr.bf16.mxu0 %v3983_v0  ;;  %3761 = vmatprep.subr.bf16.mxu1 %v3983_v0 }
 0x1f6   : > { %v597_v44 = vcombine.high %v595_v40, %v595_v40  ;;  %v611_v45 = vrot.slane %v595_v40, %v4247_v26  ;;  %v618_v46 = vrot.slane %v596_v41, %v4247_v26  ;;  %v626_v47 = vcombine.high %v604_v42, %v604_v42  ;;  %639 = vst.msk [vmem:[%s4268_s10] sm:$0x1] %vm638_vm10, %v604_v42  ;;  %v1794_v41 = vld [vmem:[%s4134_s26 + $0x18] sm:$0x1]  ;;  %v1797_v42 = vld [vmem:[%s4134_s26 + $0x9] sm:$0x1] }
 0x1f7   : > { %3760 = vmatpush3.bf16.msra.mxu0 %v4155_v5  ;;  %3763 = vmatpush3.bf16.msra.mxu1 %v4162_v9 }
 0x1f8   : > { %3606 = vmatprep.mubr.msk.f32.mxu0 %vm3984_vm0, %v3985_v1  ;;  %v625_v48 = vrot.slane %v597_v44, %v4247_v26  ;;  %v627_v49 = vcombine.high %v611_v45, %v611_v45  ;;  %v628_v50 = vcombine.high %v618_v46, %v618_v46  ;;  %640 = vst.msk [vmem:[%s4268_s10 + $0x8] sm:$0x1] %vm638_vm10, %v618_v46  ;;  %641 = vst.msk [vmem:[%s4268_s10 + $0x10] sm:$0x1] %vm638_vm10, %v626_v47  ;;  %v1795_v44 = vld [vmem:[%s4134_s26 + $0x28] sm:$0x1] }
 0x1f9   : > { %643 = vst.msk [vmem:[%s4268_s10 + $0x20] sm:$0x1] %vm638_vm10, %v611_v45  ;;  %3613 = vmatprep.mubr.msk.f32.mxu1 %vm3984_vm0, %v3985_v1  ;;  %3616 = vmatprep.subr.mxu0 %v3985_v1  ;;  %v1799_v45 = vld [vmem:[%s4134_s26 + $0x29] sm:$0x1]  ;;  %v1805_v46 = vrot.slane %v1794_v41, 7  ;;  %v1816_v47 = vrot.slane %v1797_v42, 4 }
 0x1fa   : > { %3607 = vmatmul.mubr.msk.f32.vlgmr.msra.gmra.mrb[8].mxu0 %vm283_vm8, %v1060_v43  ;;  %3621 = vmatprep.subr.mxu1 %v3985_v1  ;;  %v629_v53 = vcombine.high %v625_v48, %v625_v48  ;;  %642 = vst.msk [vmem:[%s4268_s10 + $0x18] sm:$0x1] %vm638_vm10, %v628_v50  ;;  %644 = vst.msk [vmem:[%s4268_s10 + $0x28] sm:$0x1] %vm638_vm10, %v625_v48  ;;  %v1796_v50 = vld [vmem:[%s4134_s26 + $0x38] sm:$0x1] }
 0x1fb   : > { %645 = vst.msk [vmem:[%s4268_s10 + $0x30] sm:$0x1] %vm638_vm10, %v627_v49  ;;  %3614 = vmatmul.mubr.msk.f32.vlgmr.msra.gmra.mrb[8].mxu1 %vm283_vm8, %v1060_v43  ;;  %3618 = vmatprep.mubr.msk.f32.mxu0 %vm3984_vm0, %v3985_v1  ;;  %v1798_v43 = vld [vmem:[%s4134_s26 + $0x19] sm:$0x1]  ;;  %v1793_v49 = vld [vmem:[%s4134_s26 + $0x8] sm:$0x1] }
 0x1fc   : > { %3623 = vmatprep.mubr.msk.f32.mxu1 %vm3984_vm0, %v3985_v1  ;;  %646 = vst.msk [vmem:[%s4268_s10 + $0x38] sm:$0x1] %vm638_vm10, %v629_v53  ;;  %v1817_v48 = vrot.slane %v1798_v43, 3  ;;  %v1800_v53 = vld [vmem:[%s4134_s26 + $0x39] sm:$0x1]  ;;  %v1807_v54 = vrot.slane %v1795_v44, 6  ;;  %v1806_v57 = vsel %vm257_vm1, %v1805_v46, %v1793_v49 }
 0x1fd   : > { %v1819_v55 = vrot.slane %v1799_v45, 2  ;;  %v1809_v63 = vrot.slane %v1796_v50, 5  ;;  %v1821_v2 = vrot.slane %v1800_v53, 1 }
 0x1fe   : > { %v1818_v58 = vsel %vm272_vm4, %v1817_v48, %v1816_v47  ;;  %v1808_v3 = vsel %vm260_vm2, %v1807_v54, %v1806_v57 }
 0x1ff   : > { %v1820_v4 = vsel %vm275_vm5, %v1819_v55, %v1818_v58 }
 0x2c7   : > { %v888_v6 = vpop.f32.mrb[6].mxu0  ;;  %v958_v7 = vpop.f32.mrb[6].mxu1 }
 0x2c8   : > { %v959_v11 = vadd.f32 %v958_v7, %v888_v6  ;;  %v3596_v12 = vpop.f32.mrb[7].mxu0  ;;  %v3601_v13 = vpop.f32.mrb[7].mxu1 }
 0x2c9   : > { %v1810_v12 = vsel %vm263_vm3, %v1809_v63, %v1808_v3  ;;  %v1822_v13 = vsel %vm278_vm6, %v1821_v2, %v1820_v4 }
 0x2ca   : > { %v962_v16 = vadd.f32 %v959_v11, %v4243_v18 }
 0x2cc   : > { %v964_v20 = vcombine.high %v962_v16, %v962_v16  ;;  %v971_v21 = vrot.slane %v962_v16, %v4247_v26 }
 0x2cd   : > { %v1130_v22 = vpop.f32.mrb[8].mxu0 }
 0x2ce   : > { %v1200_v23 = vpop.f32.mrb[8].mxu1  ;;  %v3608_v24 = vpop.f32.mrb[9].mxu0  ;;  %3622 = vmatpush3.msra.mxu1 %v1130_v22  ;;  %v978_v28 = vrot.slane %v964_v20, %v4247_v26  ;;  %v979_v29 = vcombine.high %v971_v21, %v971_v21  ;;  %v987_v30 = vrot.slane %v971_v21, %v4247_v26  ;;  %v1824_v20 = vsel %vm281_vm7, %v1810_v12, %v1822_v13 }
 0x2cf   : > { %v3615_v31 = vpop.f32.mrb[9].mxu1  ;;  %3617 = vmatpush3.msra.mxu0 %v1200_v23  ;;  %3624 = vmatmul.mubr.msk.f32.vlgmr.msra.gmra.mrb[10].mxu1 %vm427_vm9, %v4210_v52 }
 0x2d0   : > { %3619 = vmatmul.mubr.msk.f32.vlgmr.msra.gmra.mrb[10].mxu0 %vm427_vm9, %v4205_v51  ;;  %3764 = vmatprep.subr.bf16.mxu0 %v3983_v0  ;;  %v980_v32 = vcombine.high %v978_v28, %v978_v28  ;;  %v994_v33 = vrot.slane %v978_v28, %v4247_v26  ;;  %v1001_v34 = vrot.slane %v979_v29, %v4247_v26  ;;  %v2179_v31 = vld [vmem:[%s4134_s26 + $0xb] sm:$0x1] }
 0x2d1   : > { %v1009_v35 = vcombine.high %v987_v30, %v987_v30  ;;  %1021 = vst.msk [vmem:[%s4268_s10 + $0x1] sm:$0x1] %vm638_vm10, %v987_v30  ;;  %3767 = vmatprep.subr.bf16.mxu1 %v3983_v0  ;;  %3766 = vmatpush3.bf16.msra.mxu0 %v4155_v5  ;;  %v2176_v30 = vld [vmem:[%s4134_s26 + $0x1a] sm:$0x1] }
 0x2d2   : > { %3769 = vmatpush3.bf16.msra.mxu1 %v4162_v9  ;;  %v1008_v37 = vrot.slane %v980_v32, %v4247_v26  ;;  %v1010_v38 = vcombine.high %v994_v33, %v994_v33  ;;  %v1011_v39 = vcombine.high %v1001_v34, %v1001_v34  ;;  %1022 = vst.msk [vmem:[%s4268_s10 + $0x9] sm:$0x1] %vm638_vm10, %v1001_v34  ;;  %1025 = vst.msk [vmem:[%s4268_s10 + $0x21] sm:$0x1] %vm638_vm10, %v994_v33  ;;  %v2180_v32 = vld [vmem:[%s4134_s26 + $0x1b] sm:$0x1] }
 0x2d3   : > { %1023 = vst.msk [vmem:[%s4268_s10 + $0x11] sm:$0x1] %vm638_vm10, %v1009_v35  ;;  %3630 = vmatprep.mubr.msk.f32.mxu0 %vm3984_vm0, %v3985_v1  ;;  %3637 = vmatprep.mubr.msk.f32.mxu1 %vm3984_vm0, %v3985_v1  ;;  %v2177_v33 = vld [vmem:[%s4134_s26 + $0x2a] sm:$0x1]  ;;  %v2181_v34 = vld [vmem:[%s4134_s26 + $0x2b] sm:$0x1] }
 0x2d4   : > { %3640 = vmatprep.subr.mxu0 %v3985_v1  ;;  %3645 = vmatprep.subr.mxu1 %v3985_v1  ;;  %v1012_v40 = vcombine.high %v1008_v37, %v1008_v37  ;;  %1024 = vst.msk [vmem:[%s4268_s10 + $0x19] sm:$0x1] %vm638_vm10, %v1011_v39  ;;  %1026 = vst.msk [vmem:[%s4268_s10 + $0x29] sm:$0x1] %vm638_vm10, %v1008_v37  ;;  %v2187_v35 = vrot.slane %v2176_v30, 7  ;;  %v2199_v37 = vrot.slane %v2180_v32, 3 }
 0x2d5   : > { %1027 = vst.msk [vmem:[%s4268_s10 + $0x31] sm:$0x1] %vm638_vm10, %v1010_v38  ;;  %3631 = vmatmul.mubr.msk.f32.vlgmr.msra.gmra.mrb[12].mxu0 %vm283_vm8, %v1442_v36  ;;  %3638 = vmatmul.mubr.msk.f32.vlgmr.msra.gmra.mrb[12].mxu1 %vm283_vm8, %v1442_v36  ;;  %v2198_v36 = vrot.slane %v2179_v31, 4  ;;  %v2175_v38 = vld [vmem:[%s4134_s26 + $0xa] sm:$0x1]  ;;  %v2189_v41 = vrot.slane %v2177_v33, 6 }
 0x2d6   : > { %3642 = vmatprep.mubr.msk.f32.mxu0 %vm3984_vm0, %v3985_v1  ;;  %3647 = vmatprep.mubr.msk.f32.mxu1 %vm3984_vm0, %v3985_v1  ;;  %1028 = vst.msk [vmem:[%s4268_s10 + $0x39] sm:$0x1] %vm638_vm10, %v1012_v40  ;;  %v2178_v39 = vld [vmem:[%s4134_s26 + $0x3a] sm:$0x1]  ;;  %v2182_v40 = vld [vmem:[%s4134_s26 + $0x3b] sm:$0x1]  ;;  %v2188_v45 = vsel %vm257_vm1, %v2187_v35, %v2175_v38 }
 0x2d7   : > { %v2201_v42 = vrot.slane %v2181_v34, 2  ;;  %v2200_v46 = vsel %vm272_vm4, %v2199_v37, %v2198_v36  ;;  %v2191_v50 = vrot.slane %v2178_v39, 5  ;;  %v2203_v53 = vrot.slane %v2182_v40, 1 }
 0x2d8   : > { %v2190_v55 = vsel %vm260_vm2, %v2189_v41, %v2188_v45 }
 0x3a2   : > { %v1340_v56 = vpop.f32.mrb[10].mxu1 }
 0x3a3   : > { %v1270_v59 = vpop.f32.mrb[10].mxu0  ;;  %v3625_v60 = vpop.f32.mrb[11].mxu1 }
 0x3a4   : > { %v1341_v61 = vadd.f32 %v1340_v56, %v1270_v59  ;;  %v3620_v62 = vpop.f32.mrb[11].mxu0  ;;  %v2202_v56 = vsel %vm275_vm5, %v2201_v42, %v2200_v46 }
 0x3a5   : > { %v2192_v62 = vsel %vm263_vm3, %v2191_v50, %v2190_v55  ;;  %v2204_v63 = vsel %vm278_vm6, %v2203_v53, %v2202_v56 }
 0x3a6   : > { %v1344_v6 = vadd.f32 %v1341_v61, %v4243_v18  ;;  %v2206_v12 = vsel %vm281_vm7, %v2192_v62, %v2204_v63 }
 0x3a8   : > { %v1346_v7 = vcombine.high %v1344_v6, %v1344_v6  ;;  %v1353_v8 = vrot.slane %v1344_v6, %v4247_v26  ;;  %v1512_v10 = vpop.f32.mrb[12].mxu0  ;;  %v1582_v11 = vpop.f32.mrb[12].mxu1 }
 0x3a9   : > { %v3632_v14 = vpop.f32.mrb[13].mxu0  ;;  %v3639_v15 = vpop.f32.mrb[13].mxu1  ;;  %3641 = vmatpush3.msra.mxu0 %v1582_v11  ;;  %3646 = vmatpush3.msra.mxu1 %v1512_v10 }
 0x3aa   : > { %v1360_v16 = vrot.slane %v1346_v7, %v4247_v26  ;;  %v1361_v17 = vcombine.high %v1353_v8, %v1353_v8  ;;  %v1369_v19 = vrot.slane %v1353_v8, %v4247_v26  ;;  %3643 = vmatmul.mubr.msk.f32.vlgmr.msra.gmra.mrb[14].mxu0 %vm427_vm9, %v4205_v51  ;;  %3648 = vmatmul.mubr.msk.f32.vlgmr.msra.gmra.mrb[14].mxu1 %vm427_vm9, %v4210_v52 }
 0x3ab   : > { %3770 = vmatprep.subr.bf16.mxu0 %v3983_v0  ;;  %3773 = vmatprep.subr.bf16.mxu1 %v3983_v0 }
 0x3ac   : > { %v1362_v21 = vcombine.high %v1360_v16, %v1360_v16  ;;  %v1376_v22 = vrot.slane %v1360_v16, %v4247_v26  ;;  %v1383_v23 = vrot.slane %v1361_v17, %v4247_v26  ;;  %v1391_v24 = vcombine.high %v1369_v19, %v1369_v19  ;;  %1403 = vst.msk [vmem:[%s4268_s10 + $0x2] sm:$0x1] %vm638_vm10, %v1369_v19  ;;  %v2558_v17 = vld [vmem:[%s4134_s26 + $0x1c] sm:$0x1]  ;;  %v2561_v19 = vld [vmem:[%s4134_s26 + $0xd] sm:$0x1] }
 0x3ad   : > { %3772 = vmatpush3.bf16.msra.mxu0 %v4155_v5  ;;  %3775 = vmatpush3.bf16.msra.mxu1 %v4162_v9 }
 0x3ae   : > { %3654 = vmatprep.mubr.msk.f32.mxu0 %vm3984_vm0, %v3985_v1  ;;  %v1390_v25 = vrot.slane %v1362_v21, %v4247_v26  ;;  %v1392_v27 = vcombine.high %v1376_v22, %v1376_v22  ;;  %v1393_v28 = vcombine.high %v1383_v23, %v1383_v23  ;;  %1404 = vst.msk [vmem:[%s4268_s10 + $0xa] sm:$0x1] %vm638_vm10, %v1383_v23  ;;  %1405 = vst.msk [vmem:[%s4268_s10 + $0x12] sm:$0x1] %vm638_vm10, %v1391_v24  ;;  %v2559_v21 = vld [vmem:[%s4134_s26 + $0x2c] sm:$0x1] }
 0x3af   : > { %1407 = vst.msk [vmem:[%s4268_s10 + $0x22] sm:$0x1] %vm638_vm10, %v1376_v22  ;;  %3661 = vmatprep.mubr.msk.f32.mxu1 %vm3984_vm0, %v3985_v1  ;;  %3664 = vmatprep.subr.mxu0 %v3985_v1  ;;  %v2563_v22 = vld [vmem:[%s4134_s26 + $0x2d] sm:$0x1]  ;;  %v2569_v23 = vrot.slane %v2558_v17, 7  ;;  %v2580_v24 = vrot.slane %v2561_v19, 4 }
 0x3b0   : > { %3655 = vmatmul.mubr.msk.f32.vlgmr.msra.gmra.mrb[16].mxu0 %vm283_vm8, %v1824_v20  ;;  %3669 = vmatprep.subr.mxu1 %v3985_v1  ;;  %v1394_v29 = vcombine.high %v1390_v25, %v1390_v25  ;;  %1406 = vst.msk [vmem:[%s4268_s10 + $0x1a] sm:$0x1] %vm638_vm10, %v1393_v28  ;;  %1408 = vst.msk [vmem:[%s4268_s10 + $0x2a] sm:$0x1] %vm638_vm10, %v1390_v25  ;;  %v2560_v28 = vld [vmem:[%s4134_s26 + $0x3c] sm:$0x1] }
 0x3b1   : > { %1409 = vst.msk [vmem:[%s4268_s10 + $0x32] sm:$0x1] %vm638_vm10, %v1392_v27  ;;  %3662 = vmatmul.mubr.msk.f32.vlgmr.msra.gmra.mrb[16].mxu1 %vm283_vm8, %v1824_v20  ;;  %3666 = vmatprep.mubr.msk.f32.mxu0 %vm3984_vm0, %v3985_v1  ;;  %v2562_v20 = vld [vmem:[%s4134_s26 + $0x1d] sm:$0x1]  ;;  %v2557_v27 = vld [vmem:[%s4134_s26 + $0xc] sm:$0x1] }
 0x3b2   : > { %3671 = vmatprep.mubr.msk.f32.mxu1 %vm3984_vm0, %v3985_v1  ;;  %1410 = vst.msk [vmem:[%s4268_s10 + $0x3a] sm:$0x1] %vm638_vm10, %v1394_v29  ;;  %v2581_v25 = vrot.slane %v2562_v20, 3  ;;  %v2564_v29 = vld [vmem:[%s4134_s26 + $0x3d] sm:$0x1]  ;;  %v2571_v30 = vrot.slane %v2559_v21, 6  ;;  %v2570_v33 = vsel %vm257_vm1, %v2569_v23, %v2557_v27 }
 0x3b3   : > { %v2583_v31 = vrot.slane %v2563_v22, 2  ;;  %v2573_v39 = vrot.slane %v2560_v28, 5  ;;  %v2585_v40 = vrot.slane %v2564_v29, 1 }
 0x3b4   : > { %v2582_v34 = vsel %vm272_vm4, %v2581_v25, %v2580_v24  ;;  %v2572_v41 = vsel %vm260_vm2, %v2571_v30, %v2570_v33 }
 0x3b5   : > { %v2584_v42 = vsel %vm275_vm5, %v2583_v31, %v2582_v34 }
 0x47d   : > { %v1652_v43 = vpop.f32.mrb[14].mxu0  ;;  %v1722_v44 = vpop.f32.mrb[14].mxu1 }
 0x47e   : > { %v1723_v47 = vadd.f32 %v1722_v44, %v1652_v43  ;;  %v3644_v48 = vpop.f32.mrb[15].mxu0  ;;  %v3649_v49 = vpop.f32.mrb[15].mxu1 }
 0x47f   : > { %v2574_v48 = vsel %vm263_vm3, %v2573_v39, %v2572_v41  ;;  %v2586_v49 = vsel %vm278_vm6, %v2585_v40, %v2584_v42 }
 0x480   : > { %v1726_v54 = vadd.f32 %v1723_v47, %v4243_v18 }
 0x482   : > { %v1728_v57 = vcombine.high %v1726_v54, %v1726_v54  ;;  %v1735_v58 = vrot.slane %v1726_v54, %v4247_v26 }
 0x483   : > { %v1894_v59 = vpop.f32.mrb[16].mxu0 }
 0x484   : > { %v1964_v60 = vpop.f32.mrb[16].mxu1  ;;  %v3656_v61 = vpop.f32.mrb[17].mxu0  ;;  %3670 = vmatpush3.msra.mxu1 %v1894_v59  ;;  %v1742_v2 = vrot.slane %v1728_v57, %v4247_v26  ;;  %v1743_v3 = vcombine.high %v1735_v58, %v1735_v58  ;;  %v1751_v4 = vrot.slane %v1735_v58, %v4247_v26  ;;  %v2588_v57 = vsel %vm281_vm7, %v2574_v48, %v2586_v49 }
 0x485   : > { %v3663_v6 = vpop.f32.mrb[17].mxu1  ;;  %3665 = vmatpush3.msra.mxu0 %v1964_v60  ;;  %3672 = vmatmul.mubr.msk.f32.vlgmr.msra.gmra.mrb[18].mxu1 %vm427_vm9, %v4210_v52 }
 0x486   : > { %3667 = vmatmul.mubr.msk.f32.vlgmr.msra.gmra.mrb[18].mxu0 %vm427_vm9, %v4205_v51  ;;  %3776 = vmatprep.subr.bf16.mxu0 %v3983_v0  ;;  %v1744_v7 = vcombine.high %v1742_v2, %v1742_v2  ;;  %v1758_v8 = vrot.slane %v1742_v2, %v4247_v26  ;;  %v1765_v10 = vrot.slane %v1743_v3, %v4247_v26  ;;  %v2943_v6 = vld [vmem:[%s4134_s26 + $0xf] sm:$0x1] }
 0x487   : > { %v1773_v11 = vcombine.high %v1751_v4, %v1751_v4  ;;  %1785 = vst.msk [vmem:[%s4268_s10 + $0x3] sm:$0x1] %vm638_vm10, %v1751_v4  ;;  %3779 = vmatprep.subr.bf16.mxu1 %v3983_v0  ;;  %3778 = vmatpush3.bf16.msra.mxu0 %v4155_v5  ;;  %v2940_v4 = vld [vmem:[%s4134_s26 + $0x1e] sm:$0x1] }
 0x488   : > { %3781 = vmatpush3.bf16.msra.mxu1 %v4162_v9  ;;  %v1772_v13 = vrot.slane %v1744_v7, %v4247_v26  ;;  %v1774_v14 = vcombine.high %v1758_v8, %v1758_v8  ;;  %v1775_v15 = vcombine.high %v1765_v10, %v1765_v10  ;;  %1786 = vst.msk [vmem:[%s4268_s10 + $0xb] sm:$0x1] %vm638_vm10, %v1765_v10  ;;  %1789 = vst.msk [vmem:[%s4268_s10 + $0x23] sm:$0x1] %vm638_vm10, %v1758_v8  ;;  %v2944_v7 = vld [vmem:[%s4134_s26 + $0x1f] sm:$0x1] }
 0x489   : > { %1787 = vst.msk [vmem:[%s4268_s10 + $0x13] sm:$0x1] %vm638_vm10, %v1773_v11  ;;  %3678 = vmatprep.mubr.msk.f32.mxu0 %vm3984_vm0, %v3985_v1  ;;  %3685 = vmatprep.mubr.msk.f32.mxu1 %vm3984_vm0, %v3985_v1  ;;  %v2941_v8 = vld [vmem:[%s4134_s26 + $0x2e] sm:$0x1]  ;;  %v2945_v10 = vld [vmem:[%s4134_s26 + $0x2f] sm:$0x1] }
 0x48a   : > { %3688 = vmatprep.subr.mxu0 %v3985_v1  ;;  %3693 = vmatprep.subr.mxu1 %v3985_v1  ;;  %v1776_v16 = vcombine.high %v1772_v13, %v1772_v13  ;;  %1788 = vst.msk [vmem:[%s4268_s10 + $0x1b] sm:$0x1] %vm638_vm10, %v1775_v15  ;;  %1790 = vst.msk [vmem:[%s4268_s10 + $0x2b] sm:$0x1] %vm638_vm10, %v1772_v13  ;;  %v2951_v11 = vrot.slane %v2940_v4, 7  ;;  %v2963_v13 = vrot.slane %v2944_v7, 3 }
 0x48b   : > { %1791 = vst.msk [vmem:[%s4268_s10 + $0x33] sm:$0x1] %vm638_vm10, %v1774_v14  ;;  %3679 = vmatmul.mubr.msk.f32.vlgmr.msra.gmra.mrb[20].mxu0 %vm283_vm8, %v2206_v12  ;;  %3686 = vmatmul.mubr.msk.f32.vlgmr.msra.gmra.mrb[20].mxu1 %vm283_vm8, %v2206_v12  ;;  %v2962_v12 = vrot.slane %v2943_v6, 4  ;;  %v2939_v14 = vld [vmem:[%s4134_s26 + $0xe] sm:$0x1]  ;;  %v2953_v17 = vrot.slane %v2941_v8, 6 }
 0x48c   : > { %3690 = vmatprep.mubr.msk.f32.mxu0 %vm3984_vm0, %v3985_v1  ;;  %3695 = vmatprep.mubr.msk.f32.mxu1 %vm3984_vm0, %v3985_v1  ;;  %1792 = vst.msk [vmem:[%s4268_s10 + $0x3b] sm:$0x1] %vm638_vm10, %v1776_v16  ;;  %v2942_v15 = vld [vmem:[%s4134_s26 + $0x3e] sm:$0x1]  ;;  %v2946_v16 = vld [vmem:[%s4134_s26 + $0x3f] sm:$0x1]  ;;  %v2952_v22 = vsel %vm257_vm1, %v2951_v11, %v2939_v14 }
 0x48d   : > { %v2965_v19 = vrot.slane %v2945_v10, 2  ;;  %v2964_v23 = vsel %vm272_vm4, %v2963_v13, %v2962_v12  ;;  %v2955_v28 = vrot.slane %v2942_v15, 5  ;;  %v2967_v29 = vrot.slane %v2946_v16, 1  ;;  %s3336_s26 = sshll.u32 %s4268_s10, 4  ;;  %s4640_s26 = int_to_ptr.vmem [resolvable:$true] %s3336_s26 }
 0x48e   : > { %v2954_v31 = vsel %vm260_vm2, %v2953_v17, %v2952_v22  ;;  %s3896_s6 = scalar_lea.vmem %s4640_s26, 1024  ;;  %p3903_p6 = scmp.lt.s32.totalorder %s4640_s26, %s3901_s7 }
 0x48f   : > { %p3897_p8 = scmp.ne.s32.totalorder %s4640_s26, %s3896_s6  ;;  %p3904_p13 = scmp.lt.s32.totalorder %s3902_s8, %s3896_s6 }
 0x491   : > { %p3898_p11 = pnand %p3897_p8, %p4709_p9  ;;  %p3905_p2 = por %p3904_p13, %p3903_p6 }
 0x493   : > { %p3899_p0 = pneg %p3898_p11 }
 0x495   : > { %p3906_p5 = pnand %p3905_p2, %p3899_p0 }
 0x558   : > { %v2104_v32 = vpop.f32.mrb[18].mxu1 }
 0x559   : > { %v2034_v35 = vpop.f32.mrb[18].mxu0  ;;  %v3673_v36 = vpop.f32.mrb[19].mxu1 }
 0x55a   : > { %v2105_v37 = vadd.f32 %v2104_v32, %v2034_v35  ;;  %v3668_v38 = vpop.f32.mrb[19].mxu0  ;;  %v2966_v32 = vsel %vm275_vm5, %v2965_v19, %v2964_v23 }
 0x55b   : > { %v2956_v38 = vsel %vm263_vm3, %v2955_v28, %v2954_v31  ;;  %v2968_v39 = vsel %vm278_vm6, %v2967_v29, %v2966_v32 }
 0x55c   : > { %v2108_v43 = vadd.f32 %v2105_v37, %v4243_v18  ;;  %v2970_v48 = vsel %vm281_vm7, %v2956_v38, %v2968_v39 }
 0x55e   : > { %v2110_v44 = vcombine.high %v2108_v43, %v2108_v43  ;;  %v2117_v45 = vrot.slane %v2108_v43, %v4247_v26  ;;  %v2276_v46 = vpop.f32.mrb[20].mxu0  ;;  %v2346_v47 = vpop.f32.mrb[20].mxu1 }
 0x55f   : > { %v3680_v50 = vpop.f32.mrb[21].mxu0  ;;  %v3687_v53 = vpop.f32.mrb[21].mxu1  ;;  %3689 = vmatpush3.msra.mxu0 %v2346_v47  ;;  %3694 = vmatpush3.msra.mxu1 %v2276_v46 }
 0x560   : > { %v2124_v54 = vrot.slane %v2110_v44, %v4247_v26  ;;  %v2125_v55 = vcombine.high %v2117_v45, %v2117_v45  ;;  %v2133_v56 = vrot.slane %v2117_v45, %v4247_v26  ;;  %3691 = vmatmul.mubr.msk.f32.vlgmr.msra.gmra.mrb[22].mxu0 %vm427_vm9, %v4205_v51  ;;  %3696 = vmatmul.mubr.msk.f32.vlgmr.msra.gmra.mrb[22].mxu1 %vm427_vm9, %v4210_v52 }
 0x561   : > { %3782 = vmatprep.subr.bf16.mxu0 %v3983_v0  ;;  %3785 = vmatprep.subr.bf16.mxu1 %v3983_v0 }
 0x562   : > { %v2126_v58 = vcombine.high %v2124_v54, %v2124_v54  ;;  %v2140_v59 = vrot.slane %v2124_v54, %v4247_v26  ;;  %v2147_v60 = vrot.slane %v2125_v55, %v4247_v26  ;;  %v2155_v61 = vcombine.high %v2133_v56, %v2133_v56  ;;  %2167 = vst.msk [vmem:[%s4268_s10 + $0x4] sm:$0x1] %vm638_vm10, %v2133_v56 }
 0x563   : > { %3784 = vmatpush3.bf16.msra.mxu0 %v4155_v5  ;;  %3787 = vmatpush3.bf16.msra.mxu1 %v4162_v9 }
 0x564   : > { %3702 = vmatprep.mubr.msk.f32.mxu0 %vm3984_vm0, %v3985_v1  ;;  %v2154_v62 = vrot.slane %v2126_v58, %v4247_v26  ;;  %v2156_v63 = vcombine.high %v2140_v59, %v2140_v59  ;;  %v2157_v2 = vcombine.high %v2147_v60, %v2147_v60  ;;  %2168 = vst.msk [vmem:[%s4268_s10 + $0xc] sm:$0x1] %vm638_vm10, %v2147_v60  ;;  %2169 = vst.msk [vmem:[%s4268_s10 + $0x14] sm:$0x1] %vm638_vm10, %v2155_v61 }
 0x565   : > { %2171 = vst.msk [vmem:[%s4268_s10 + $0x24] sm:$0x1] %vm638_vm10, %v2140_v59  ;;  %3709 = vmatprep.mubr.msk.f32.mxu1 %vm3984_vm0, %v3985_v1  ;;  %3712 = vmatprep.subr.mxu0 %v3985_v1 }
 0x566   : > { %3703 = vmatmul.mubr.msk.f32.vlgmr.msra.gmra.mrb[24].mxu0 %vm283_vm8, %v2588_v57  ;;  %3717 = vmatprep.subr.mxu1 %v3985_v1  ;;  %v2158_v3 = vcombine.high %v2154_v62, %v2154_v62  ;;  %2170 = vst.msk [vmem:[%s4268_s10 + $0x1c] sm:$0x1] %vm638_vm10, %v2157_v2  ;;  %2172 = vst.msk [vmem:[%s4268_s10 + $0x2c] sm:$0x1] %vm638_vm10, %v2154_v62 }
 0x567   : > { %2173 = vst.msk [vmem:[%s4268_s10 + $0x34] sm:$0x1] %vm638_vm10, %v2156_v63  ;;  %3710 = vmatmul.mubr.msk.f32.vlgmr.msra.gmra.mrb[24].mxu1 %vm283_vm8, %v2588_v57  ;;  %3714 = vmatprep.mubr.msk.f32.mxu0 %vm3984_vm0, %v3985_v1 }
 0x568   : > { %3719 = vmatprep.mubr.msk.f32.mxu1 %vm3984_vm0, %v3985_v1  ;;  %2174 = vst.msk [vmem:[%s4268_s10 + $0x3c] sm:$0x1] %vm638_vm10, %v2158_v3 }
 0x633   : > { %v2416_v20 = vpop.f32.mrb[22].mxu0  ;;  %v2486_v21 = vpop.f32.mrb[22].mxu1 }
 0x634   : > { %v2487_v24 = vadd.f32 %v2486_v21, %v2416_v20  ;;  %v3692_v25 = vpop.f32.mrb[23].mxu0  ;;  %v3697_v27 = vpop.f32.mrb[23].mxu1 }
 0x636   : > { %v2490_v30 = vadd.f32 %v2487_v24, %v4243_v18 }
 0x638   : > { %v2492_v33 = vcombine.high %v2490_v30, %v2490_v30  ;;  %v2499_v34 = vrot.slane %v2490_v30, %v4247_v26 }
 0x639   : > { %v2658_v35 = vpop.f32.mrb[24].mxu0 }
 0x63a   : > { %v2728_v36 = vpop.f32.mrb[24].mxu1  ;;  %v3704_v37 = vpop.f32.mrb[25].mxu0  ;;  %3718 = vmatpush3.msra.mxu1 %v2658_v35  ;;  %v2506_v40 = vrot.slane %v2492_v33, %v4247_v26  ;;  %v2507_v41 = vcombine.high %v2499_v34, %v2499_v34  ;;  %v2515_v42 = vrot.slane %v2499_v34, %v4247_v26 }
 0x63b   : > { %v3711_v43 = vpop.f32.mrb[25].mxu1  ;;  %3713 = vmatpush3.msra.mxu0 %v2728_v36  ;;  %3720 = vmatmul.mubr.msk.f32.vlgmr.msra.gmra.mrb[26].mxu1 %vm427_vm9, %v4210_v52 }
 0x63c   : > { %3715 = vmatmul.mubr.msk.f32.vlgmr.msra.gmra.mrb[26].mxu0 %vm427_vm9, %v4205_v51  ;;  %3788 = vmatprep.subr.bf16.mxu0 %v3983_v0  ;;  %v2508_v44 = vcombine.high %v2506_v40, %v2506_v40  ;;  %v2522_v45 = vrot.slane %v2506_v40, %v4247_v26  ;;  %v2529_v46 = vrot.slane %v2507_v41, %v4247_v26 }
 0x63d   : > { %v2537_v47 = vcombine.high %v2515_v42, %v2515_v42  ;;  %2549 = vst.msk [vmem:[%s4268_s10 + $0x5] sm:$0x1] %vm638_vm10, %v2515_v42  ;;  %3791 = vmatprep.subr.bf16.mxu1 %v3983_v0  ;;  %3790 = vmatpush3.bf16.msra.mxu0 %v4155_v5 }
 0x63e   : > { %3793 = vmatpush3.bf16.msra.mxu1 %v4162_v9  ;;  %v2536_v49 = vrot.slane %v2508_v44, %v4247_v26  ;;  %v2538_v50 = vcombine.high %v2522_v45, %v2522_v45  ;;  %v2539_v53 = vcombine.high %v2529_v46, %v2529_v46  ;;  %2550 = vst.msk [vmem:[%s4268_s10 + $0xd] sm:$0x1] %vm638_vm10, %v2529_v46  ;;  %2553 = vst.msk [vmem:[%s4268_s10 + $0x25] sm:$0x1] %vm638_vm10, %v2522_v45 }
 0x63f   : > { %2551 = vst.msk [vmem:[%s4268_s10 + $0x15] sm:$0x1] %vm638_vm10, %v2537_v47  ;;  %3726 = vmatprep.mubr.msk.f32.mxu0 %vm3984_vm0, %v3985_v1  ;;  %3733 = vmatprep.mubr.msk.f32.mxu1 %vm3984_vm0, %v3985_v1 }
 0x640   : > { %3736 = vmatprep.subr.mxu0 %v3985_v1  ;;  %3741 = vmatprep.subr.mxu1 %v3985_v1  ;;  %v2540_v0 = vcombine.high %v2536_v49, %v2536_v49  ;;  %2552 = vst.msk [vmem:[%s4268_s10 + $0x1d] sm:$0x1] %vm638_vm10, %v2539_v53  ;;  %2554 = vst.msk [vmem:[%s4268_s10 + $0x2d] sm:$0x1] %vm638_vm10, %v2536_v49 }
 0x641   : > { %2555 = vst.msk [vmem:[%s4268_s10 + $0x35] sm:$0x1] %vm638_vm10, %v2538_v50  ;;  %3727 = vmatmul.mubr.msk.f32.vlgmr.msra.gmra.mrb[28].mxu0 %vm283_vm8, %v2970_v48  ;;  %3734 = vmatmul.mubr.msk.f32.vlgmr.msra.gmra.mrb[28].mxu1 %vm283_vm8, %v2970_v48 }
 0x642   : > { %3738 = vmatprep.mubr.msk.f32.mxu0 %vm3984_vm0, %v3985_v1  ;;  %3743 = vmatprep.mubr.msk.f32.mxu1 %vm3984_vm0, %v3985_v1  ;;  %2556 = vst.msk [vmem:[%s4268_s10 + $0x3d] sm:$0x1] %vm638_vm10, %v2540_v0 }
 0x70e   : > { %v2868_v5 = vpop.f32.mrb[26].mxu1 }
 0x70f   : > { %v2798_v9 = vpop.f32.mrb[26].mxu0  ;;  %v3721_v54 = vpop.f32.mrb[27].mxu1 }
 0x710   : > { %v2869_v55 = vadd.f32 %v2868_v5, %v2798_v9  ;;  %v3716_v56 = vpop.f32.mrb[27].mxu0 }
 0x712   : > { %v2872_v57 = vadd.f32 %v2869_v55, %v4243_v18 }
 0x714   : > { %v2874_v58 = vcombine.high %v2872_v57, %v2872_v57  ;;  %v2881_v59 = vrot.slane %v2872_v57, %v4247_v26  ;;  %v3040_v60 = vpop.f32.mrb[28].mxu0  ;;  %v3110_v61 = vpop.f32.mrb[28].mxu1 }
 0x715   : > { %v3728_v62 = vpop.f32.mrb[29].mxu0  ;;  %v3735_v63 = vpop.f32.mrb[29].mxu1  ;;  %3737 = vmatpush3.msra.mxu0 %v3110_v61  ;;  %3742 = vmatpush3.msra.mxu1 %v3040_v60 }
 0x716   : > { %v2888_v1 = vrot.slane %v2874_v58, %v4247_v26  ;;  %v2889_v2 = vcombine.high %v2881_v59, %v2881_v59  ;;  %v2897_v3 = vrot.slane %v2881_v59, %v4247_v26  ;;  %3739 = vmatmul.mubr.msk.f32.vlgmr.msra.gmra.mrb[30].mxu0 %vm427_vm9, %v4205_v51  ;;  %3744 = vmatmul.mubr.msk.f32.vlgmr.msra.gmra.mrb[30].mxu1 %vm427_vm9, %v4210_v52 }
 0x718   : > { %v2890_v4 = vcombine.high %v2888_v1, %v2888_v1  ;;  %v2904_v6 = vrot.slane %v2888_v1, %v4247_v26  ;;  %v2911_v7 = vrot.slane %v2889_v2, %v4247_v26  ;;  %v2919_v8 = vcombine.high %v2897_v3, %v2897_v3  ;;  %2931 = vst.msk [vmem:[%s4268_s10 + $0x6] sm:$0x1] %vm638_vm10, %v2897_v3 }
 0x71a   : > { %v2918_v10 = vrot.slane %v2890_v4, %v4247_v26  ;;  %v2920_v11 = vcombine.high %v2904_v6, %v2904_v6  ;;  %v2921_v12 = vcombine.high %v2911_v7, %v2911_v7  ;;  %2932 = vst.msk [vmem:[%s4268_s10 + $0xe] sm:$0x1] %vm638_vm10, %v2911_v7  ;;  %2933 = vst.msk [vmem:[%s4268_s10 + $0x16] sm:$0x1] %vm638_vm10, %v2919_v8 }
 0x71b   : > { %2935 = vst.msk [vmem:[%s4268_s10 + $0x26] sm:$0x1] %vm638_vm10, %v2904_v6 }
 0x71c   : > { %v2922_v51 = vcombine.high %v2918_v10, %v2918_v10  ;;  %2934 = vst.msk [vmem:[%s4268_s10 + $0x1e] sm:$0x1] %vm638_vm10, %v2921_v12  ;;  %2936 = vst.msk [vmem:[%s4268_s10 + $0x2e] sm:$0x1] %vm638_vm10, %v2918_v10 }
 0x71d   : > { %2937 = vst.msk [vmem:[%s4268_s10 + $0x36] sm:$0x1] %vm638_vm10, %v2920_v11 }
 0x71e   : > { %2938 = vst.msk [vmem:[%s4268_s10 + $0x3e] sm:$0x1] %vm638_vm10, %v2922_v51 }
 0x7e9   : > { %v3180_v52 = vpop.f32.mrb[30].mxu0  ;;  %v3250_v13 = vpop.f32.mrb[30].mxu1 }
 0x7ea   : > { %v3251_v14 = vadd.f32 %v3250_v13, %v3180_v52  ;;  %v3740_v15 = vpop.f32.mrb[31].mxu0  ;;  %v3745_v16 = vpop.f32.mrb[31].mxu1 }
 0x7ec   : > { %v3254_v17 = vadd.f32 %v3251_v14, %v4243_v18 }
 0x7ee   : > { %v3256_v19 = vcombine.high %v3254_v17, %v3254_v17  ;;  %v3263_v20 = vrot.slane %v3254_v17, %v4247_v26 }
 0x7f0   : > { %v3270_v21 = vrot.slane %v3256_v19, %v4247_v26  ;;  %v3271_v22 = vcombine.high %v3263_v20, %v3263_v20  ;;  %v3279_v23 = vrot.slane %v3263_v20, %v4247_v26 }
 0x7f2   : > { %v3272_v24 = vcombine.high %v3270_v21, %v3270_v21  ;;  %v3286_v25 = vrot.slane %v3270_v21, %v4247_v26  ;;  %v3293_v27 = vrot.slane %v3271_v22, %v4247_v26  ;;  %v3301_v18 = vcombine.high %v3279_v23, %v3279_v23  ;;  %3313 = vst.msk [vmem:[%s4268_s10 + $0x7] sm:$0x1] %vm638_vm10, %v3279_v23 }
 0x7f4   : > { %v3300_v28 = vrot.slane %v3272_v24, %v4247_v26  ;;  %v3302_v29 = vcombine.high %v3286_v25, %v3286_v25  ;;  %v3303_v30 = vcombine.high %v3293_v27, %v3293_v27  ;;  %3314 = vst.msk [vmem:[%s4268_s10 + $0xf] sm:$0x1] %vm638_vm10, %v3293_v27  ;;  %3315 = vst.msk [vmem:[%s4268_s10 + $0x17] sm:$0x1] %vm638_vm10, %v3301_v18 }
 0x7f5   : > { %3317 = vst.msk [vmem:[%s4268_s10 + $0x27] sm:$0x1] %vm638_vm10, %v3286_v25 }
 0x7f6   : > { %v3304_v26 = vcombine.high %v3300_v28, %v3300_v28  ;;  %3316 = vst.msk [vmem:[%s4268_s10 + $0x1f] sm:$0x1] %vm638_vm10, %v3303_v30  ;;  %3318 = vst.msk [vmem:[%s4268_s10 + $0x2f] sm:$0x1] %vm638_vm10, %v3300_v28 }
 0x7f7   : > { %3319 = vst.msk [vmem:[%s4268_s10 + $0x37] sm:$0x1] %vm638_vm10, %v3302_v29 }
 0x7f8   : > { %3320 = vst.msk [vmem:[%s4268_s10 + $0x3f] sm:$0x1] %vm638_vm10, %v3304_v26 }
 0x7f9   : > { %3909 = shalt.err (!%p3906_p5)
}
 0x7fa   : > { %s3910_s9 = scalar_lea.hbm %s4638_s14, 1024  ;;  %s3914_s25 = scalar_lea.hbm %s4701_s4, 2048 }
 0x7fb   : > { %p3911_p4 = scmp.ne.s32.totalorder %s4638_s14, %s3910_s9  ;;  %p3915_p12 = scmp.lt.u32.totalorder %s4638_s14, %s4701_s4 }
 0x7fc   : > { %p3916_p1 = scmp.lt.u32.totalorder %s3914_s25, %s3910_s9  ;;  %p3918_p8 = scmp.lt.u32.totalorder %s3910_s9, %s4638_s14 }
 0x7fd   : > { %p3912_p7 = pnand %p3911_p4, %p4709_p9 }
 0x7fe   : > { %p3917_p3 = por %p3916_p1, %p3915_p12 }
 0x7ff   : > { %p3913_p10 = pneg %p3912_p7 }
 0x800   : > { %p3919_p11 = por %p3918_p8, %p3917_p3 }
 0x802   : > { %p3920_p0 = pnand %p3919_p11, %p3913_p10 }
 0x804   : > { %3923 = shalt.err (!%p3920_p0)
}
 0x805   : > { %s3989_s24 = smov 128   ;;  %s3990_s12 = smov 8  }
 0x806   : > { %3796 = dma.vmem_to_hbm [thread:$0]  (%p4709_p9), %s4640_s26, 1024, %s4638_s14, %s3322_s18, %s3989_s24, %s3989_s24, %s3990_s12  }
 0x807 PF: > { %s3351_s13 = sand.u32 1, %s3958_s15   ;;  %p4710_p6 = scmp.ne.s32.totalorder %s4706_s30, 0 }
 0x808   : > { %p4711_p13 = scmp.ge.s32.totalorder %s3978_s20, 2  ;;  %s3352_s6 = scalar_lea.sflag [#allocation4], %s3351_s13 }
 0x80a   : > { %p3803_p2 = pnand %p4711_p13, %p4710_p6 }
 0x80c   : > { %3953 = dma.done.wait (!%p3803_p2), %s3352_s6, 1024  }
 0x80d   : > { %3955 = vsyncadd (!%p3803_p2), %s3352_s6, 4294966272  ;;  %s20_s20 = sadd.s32 1, %s3978_s20   ;;  %s4712_s15 = smov %s3962_s16 }
 0x80e   : > { %p17_p5 = scmp.ge.s32.totalorder %s20_s20, 4   ;;  %s4713_s16 = smov %s3966_s17 }
 0x80f   : > { %s4714_s17 = smov %s4072_s29  ;;  %s4715_s18 = smov %s3974_s19 }
 0x810   : > { %s4716_s19 = smov %s4718_s23  ;;  %19 = sbr.rel (!%p17_p5) target bundleno = 6 (0x6), region = 83 }
 0x817   :  { %3357 = vsyncpa [#allocation3], 1 }
 0x818   :  { %3359 = vsyncpa [#allocation3 + $0x1], 1 }
 0x819   :  { %3360 = vsyncpa [#allocation4], 1 }
 0x81a   :  { %3362 = vsyncpa [#allocation4 + $0x1], 1 }

</bundles_post_ra>
